<compile_context>
chip_gen: v6e
topology: v6e:2x2x1
jax: 0.10.0
libtpu: 0.0.40
codegen_flags: <defaults>
</compile_context>

<pallas_src>
import math
from functools import partial

import jax
import jax.numpy as jnp
from jax import lax
from jax.experimental import pallas as pl
from jax.experimental.pallas import tpu as pltpu


# ----------------------------------------------------------------------------
# Pallas kernel: dilated conv (as tap-wise MXU matmuls) + BatchNorm2d
# (training-mode stats, biased variance) + ReLU, for one Cout tile.
# ----------------------------------------------------------------------------
def _aspp_kernel(xin_ref, w_ref, gamma_ref, beta_ref, o_ref, *, taps, H, W, eps):
    # xin_ref  : [N, Hx, Wx, D]    activation (pre-padded or pre-im2col'd), matmul dtype
    # w_ref    : [T, D, TILE_CO]   one weight slab per tap, matmul dtype
    # gamma_ref, beta_ref : [1, TILE_CO]  f32
    # o_ref    : [N, H, W, TILE_CO]       f32
    acc = None
    for t, (ro, co) in enumerate(taps):
        tap = xin_ref[:, ro:ro + H, co:co + W, :]
        part = lax.dot_general(
            tap, w_ref[t],
            dimension_numbers=(((3,), (0,)), ((), ())),
            preferred_element_type=jnp.float32,
        )  # [N, H, W, TILE_CO] f32
        acc = part if acc is None else acc + part

    # One-pass BatchNorm2d training statistics (biased variance) per channel.
    # TODO(synk): one-pass E[x^2]-mean^2 can cancel for large-mean data; a second pass
    # over the VMEM-resident acc (or Welford) is the robust variant for production.
    denom = 1.0 / float(acc.shape[0] * acc.shape[1] * acc.shape[2])
    s1 = jnp.sum(acc, axis=(0, 1, 2), keepdims=True)
    s2 = jnp.sum(acc * acc, axis=(0, 1, 2), keepdims=True)
    mean = s1 * denom
    var = jnp.maximum(s2 * denom - mean * mean, 0.0)

    tile_co = o_ref.shape[3]
    gamma = gamma_ref[...].reshape(1, 1, 1, tile_co)
    beta = beta_ref[...].reshape(1, 1, 1, tile_co)
    scale = lax.rsqrt(var + eps) * gamma            # [1,1,1,TILE_CO] (cheap vector math)
    shift = beta - mean * scale                     # folded affine
    o_ref[...] = jnp.maximum(acc * scale + shift, 0.0).astype(o_ref.dtype)


# ----------------------------------------------------------------------------
# Plain-JAX glue: align_corners=True bilinear resize (identity when the target
# size equals the input size, which holds here since expand == 1).
# ----------------------------------------------------------------------------
def _bilinear_resize_align_corners(x, out_h, out_w):
    # x: NCHW
    N, C, H, W = x.shape
    if (out_h, out_w) == (H, W):
        return x

    def coords(out_len, in_len):
        if out_len == 1:
            return jnp.zeros((1,), jnp.float32)
        return jnp.linspace(0.0, float(in_len - 1), out_len)

    ys = coords(out_h, H)
    xs = coords(out_w, W)
    y0 = jnp.floor(ys).astype(jnp.int32)
    y1 = jnp.minimum(y0 + 1, H - 1)
    wy = (ys - y0.astype(jnp.float32))[None, None, :, None]
    x0 = jnp.floor(xs).astype(jnp.int32)
    x1 = jnp.minimum(x0 + 1, W - 1)
    wx = (xs - x0.astype(jnp.float32))[None, None, None, :]

    def gather(yi, xi):
        return x[:, :, yi, :][:, :, :, xi]

    top = gather(y0, x0) * (1.0 - wx) + gather(y0, x1) * wx
    bot = gather(y1, x0) * (1.0 - wx) + gather(y1, x1) * wx
    return top * (1.0 - wy) + bot * wy


# ----------------------------------------------------------------------------
# Wrapper reproducing AtrousDecoder.forward
# ----------------------------------------------------------------------------
def atrous_decoder_forward(x, y, params, dilation, *, matmul_dtype=jnp.bfloat16,
                           tile_co=None):
    """x, y: NCHW float32.  Returns NCHW float32 (matches AtrousDecoder.forward)."""
    # NCHW -> NHWC, concat on the channel (lane) axis; cast once for the MXU.
    # TODO(synk): concat / pad / transposes remain XLA glue; folding the dilation halo
    # into the kernel's index_map/masking would save one HBM pass over the activation.
    xh = jnp.transpose(x, (0, 2, 3, 1))
    yh = jnp.transpose(y, (0, 2, 3, 1))
    xcat = jnp.concatenate([xh, yh], axis=-1).astype(matmul_dtype)
    N, H, W, Cin = xcat.shape

    if dilation == 1:
        K, pad = 1, 0
    else:
        K, pad = 3, dilation

    w = params["conv_w"]                                   # [Cout, Cin, K, K]
    Cout = w.shape[0]
    LANE = 128
    Cout_pad = ((Cout + LANE - 1) // LANE) * LANE
    pad_co = Cout_pad - Cout
    w_ikkc = jnp.transpose(w, (2, 3, 1, 0))                # [Kh, Kw, Cin, Cout]

    prefold = (K == 1) or (Cin < 128)
    if prefold:
        # Small Cin: widen the lane axis by flattening (kh, kw, cin) onto it ONCE in
        # the wrapper -> a single deep MXU contraction, no per-grid-step relayout.
        if K == 1:
            xin = xcat
        else:
            xpad = jnp.pad(xcat, ((0, 0), (pad, pad), (pad, pad), (0, 0)))
            views = [xpad[:, kh * dilation:kh * dilation + H,
                          kw * dilation:kw * dilation + W, :]
                     for kh in range(K) for kw in range(K)]
            xin = jnp.concatenate(views, axis=-1)
        taps = ((0, 0),)
        D = K * K * Cin
        w_slab = w_ikkc.reshape(1, D, Cout)
    else:
        # Large Cin: per-tap depth already saturates the MXU; keep the activation
        # un-expanded and accumulate K*K taps inside the kernel (no im2col patch).
        xin = jnp.pad(xcat, ((0, 0), (pad, pad), (pad, pad), (0, 0)))
        taps = tuple((kh * dilation, kw * dilation)
                     for kh in range(K) for kw in range(K))
        D = Cin
        w_slab = w_ikkc.reshape(K * K, Cin, Cout)

    w_slab = jnp.pad(w_slab, ((0, 0), (0, 0), (0, pad_co))).astype(matmul_dtype)
    gamma = jnp.pad(params["bn_gamma"], (0, pad_co),
                    constant_values=1.0).reshape(1, Cout_pad).astype(jnp.float32)
    beta = jnp.pad(params["bn_beta"], (0, pad_co),
                   constant_values=0.0).reshape(1, Cout_pad).astype(jnp.float32)

    T = len(taps)
    Hx, Wx = xin.shape[1], xin.shape[2]

    if tile_co is None:
        # 256 fills the v6e/v7x 2x256^2 MXU N-dim; 128 is enough on v5e (4x128^2).
        tile_co = 256 if Cout_pad % 256 == 0 else 128
    tile_co = min(tile_co, Cout_pad)
    n_co = Cout_pad // tile_co
    # TODO(synk): on v7x (2 TensorCores) n_co == 1 leaves a core idle; occupying both
    # needs a second parallel grid axis over N/H tiles with two-phase BN statistics.

    # Explicit VMEM budget: activation single-buffered, weight/vec/output blocks
    # double-buffered, f32 accumulator + one epilogue temp, plus generous headroom.
    def nbytes(shape, dtype):
        return math.prod(shape) * jnp.dtype(dtype).itemsize

    need = (nbytes((N, Hx, Wx, D), matmul_dtype)
            + 2 * nbytes((T, D, tile_co), matmul_dtype)
            + 4 * nbytes((1, tile_co), jnp.float32)
            + 2 * nbytes((N, H, W, tile_co), jnp.float32)       # output blocks
            + 2 * nbytes((N, H, W, tile_co), jnp.float32))      # f32 acc + epilogue temp
    # Cap at 128 MiB (v5e/v6e physical); for v7x (64 MiB) re-budget with spatial tiling.
    vmem_limit = int(min(max(2 * need + (8 << 20), 32 << 20), 128 << 20))

    kernel = partial(_aspp_kernel, taps=taps, H=H, W=W, eps=1e-5)
    out_nhwc = pl.pallas_call(
        kernel,
        out_shape=jax.ShapeDtypeStruct((N, H, W, Cout_pad), jnp.float32),
        grid=(n_co,),
        in_specs=[
            # Constant index_map across the Cout grid -> single-buffer the activation.
            pl.BlockSpec((N, Hx, Wx, D), lambda j: (0, 0, 0, 0),
                         pipeline_mode=pl.Buffered(1)),
            pl.BlockSpec((T, D, tile_co), lambda j: (0, 0, j)),   # weight slab
            pl.BlockSpec((1, tile_co), lambda j: (0, j)),         # gamma
            pl.BlockSpec((1, tile_co), lambda j: (0, j)),         # beta
        ],
        out_specs=pl.BlockSpec((N, H, W, tile_co), lambda j: (0, 0, 0, j)),
        compiler_params=pltpu.CompilerParams(
            dimension_semantics=("parallel",),
            vmem_limit_bytes=vmem_limit,
        ),
    )(xin, w_slab, gamma, beta)

    # TODO(synk): when Cout << 128 most of this f32 writeback is padded lanes and the
    # NCHW transpose re-reads the slab; fuse slice/transpose into the consumer (or emit
    # bf16) for production shapes.
    out = jnp.transpose(out_nhwc[..., :Cout], (0, 3, 1, 2)).astype(jnp.float32)

    # F.interpolate(out, size=(H*expand, H*expand), mode='bilinear', align_corners=True)
    expand = 1
    return _bilinear_resize_align_corners(out, H * expand, H * expand)


# ----------------------------------------------------------------------------
# Pure-JAX reference (correctness check for the Pallas path)
# ----------------------------------------------------------------------------
def _reference_forward(x, y, params, dilation):
    output = jnp.concatenate([x, y], axis=1)
    N, Cin, H, W = output.shape
    if dilation == 1:
        K, pad = 1, 0
    else:
        K, pad = 3, dilation
    conv = lax.conv_general_dilated(
        output, params["conv_w"],
        window_strides=(1, 1),
        padding=[(pad, pad), (pad, pad)],
        rhs_dilation=(dilation, dilation),
        dimension_numbers=("NCHW", "OIHW", "NCHW"),
    )
    mean = jnp.mean(conv, axis=(0, 2, 3), keepdims=True)
    var = jnp.mean((conv - mean) ** 2, axis=(0, 2, 3), keepdims=True)
    xn = (conv - mean) * lax.rsqrt(var + 1e-5)
    g = params["bn_gamma"].reshape(1, -1, 1, 1)
    b = params["bn_beta"].reshape(1, -1, 1, 1)
    out = jnp.maximum(xn * g + b, 0.0)
    return _bilinear_resize_align_corners(out, H, H)


if __name__ == "__main__":
    key = jax.random.PRNGKey(0)
    (kx, ky, kw2, kg2, kb2, kw1, kg1, kb1,
     kx4, ky4, kw4, kg4, kb4) = jax.random.split(key, 13)

    # --- small-Cin case (wrapper-prefolded im2col path), dilation = 2 ---
    N, Cx, Cy, H, W = 2, 4, 4, 16, 16
    in_ch, out_ch = Cx + Cy, 8
    x = jax.random.normal(kx, (N, Cx, H, W), dtype=jnp.float32)
    y = jax.random.normal(ky, (N, Cy, H, W), dtype=jnp.float32)
    params2 = {
        "conv_w": 0.1 * jax.random.normal(kw2, (out_ch, in_ch, 3, 3), dtype=jnp.float32),
        "bn_gamma": 1.0 + 0.1 * jax.random.normal(kg2, (out_ch,), dtype=jnp.float32),
        "bn_beta": 0.1 * jax.random.normal(kb2, (out_ch,), dtype=jnp.float32),
    }
    ref2 = jax.block_until_ready(_reference_forward(x, y, params2, 2))

    out_f32 = jax.block_until_ready(
        atrous_decoder_forward(x, y, params2, 2, matmul_dtype=jnp.float32))
    assert out_f32.shape == (N, out_ch, H, H), out_f32.shape
    assert jnp.allclose(out_f32, ref2, atol=1e-4, rtol=1e-4), \
        float(jnp.max(jnp.abs(out_f32 - ref2)))

    out_bf16 = jax.block_until_ready(atrous_decoder_forward(x, y, params2, 2))
    assert out_bf16.shape == (N, out_ch, H, H), out_bf16.shape
    assert jnp.allclose(out_bf16, ref2, atol=5e-2, rtol=5e-2), \
        float(jnp.max(jnp.abs(out_bf16 - ref2)))

    # --- dilation = 1 (1x1 conv path) ---
    params1 = {
        "conv_w": 0.1 * jax.random.normal(kw1, (out_ch, in_ch, 1, 1), dtype=jnp.float32),
        "bn_gamma": 1.0 + 0.1 * jax.random.normal(kg1, (out_ch,), dtype=jnp.float32),
        "bn_beta": 0.1 * jax.random.normal(kb1, (out_ch,), dtype=jnp.float32),
    }
    ref1 = jax.block_until_ready(_reference_forward(x, y, params1, 1))
    out1 = jax.block_until_ready(
        atrous_decoder_forward(x, y, params1, 1, matmul_dtype=jnp.float32))
    assert out1.shape == (N, out_ch, H, H), out1.shape
    assert jnp.allclose(out1, ref1, atol=1e-4, rtol=1e-4), \
        float(jnp.max(jnp.abs(out1 - ref1)))

    # --- large-Cin case (in-kernel tap-accumulation path), dilation = 2 ---
    Cx4 = Cy4 = 64
    in4, out4 = Cx4 + Cy4, 16
    x4 = jax.random.normal(kx4, (N, Cx4, H, W), dtype=jnp.float32)
    y4 = jax.random.normal(ky4, (N, Cy4, H, W), dtype=jnp.float32)
    params4 = {
        "conv_w": 0.1 * jax.random.normal(kw4, (out4, in4, 3, 3), dtype=jnp.float32),
        "bn_gamma": 1.0 + 0.1 * jax.random.normal(kg4, (out4,), dtype=jnp.float32),
        "bn_beta": 0.1 * jax.random.normal(kb4, (out4,), dtype=jnp.float32),
    }
    ref4 = jax.block_until_ready(_reference_forward(x4, y4, params4, 2))
    out4_ = jax.block_until_ready(
        atrous_decoder_forward(x4, y4, params4, 2, matmul_dtype=jnp.float32))
    assert out4_.shape == (N, out4, H, H), out4_.shape
    assert jnp.allclose(out4_, ref4, atol=5e-4, rtol=5e-4), \
        float(jnp.max(jnp.abs(out4_ - ref4)))

    print("KERNEL_OK")
</pallas_src>

<mosaic_0001>
module attributes {stable_mosaic.version = 11 : i64} {
  func.func @_aspp_kernel(%arg0: i32, %arg1: memref<2x16x16x72xf32, #tpu.memory_space<vmem>>, %arg2: memref<1x72x128xf32, #tpu.memory_space<vmem>>, %arg3: memref<1x128xf32, #tpu.memory_space<vmem>>, %arg4: memref<1x128xf32, #tpu.memory_space<vmem>>, %arg5: memref<2x16x16x128xf32, #tpu.memory_space<vmem>>) attributes {dimension_semantics = [#tpu.dimension_semantics<parallel>], iteration_bounds = array<i64: 1>, scalar_prefetch = 0 : i64, scratch_operands = 0 : i64, tpu.core_type = #tpu.core_type<tc>, window_params = [{pipeline_mode = #tpu.pipeline_mode<synchronous>, transform_indices = @transform_0, window_bounds = array<i64: 2, 16, 16, 72>}, {transform_indices = @transform_1, window_bounds = array<i64: 1, 72, 128>}, {transform_indices = @transform_2, window_bounds = array<i64: 1, 128>}, {transform_indices = @transform_3, window_bounds = array<i64: 1, 128>}, {transform_indices = @transform_4, window_bounds = array<i64: 2, 16, 16, 128>}]} {
    %c0 = arith.constant 0 : index
    %c0_0 = arith.constant 0 : index
    %c0_1 = arith.constant 0 : index
    %c0_2 = arith.constant 0 : index
    %0 = vector.load %arg1[%c0, %c0_0, %c0_1, %c0_2] : memref<2x16x16x72xf32, #tpu.memory_space<vmem>>, vector<2x16x16x72xf32>
    %c0_3 = arith.constant 0 : index
    %c0_4 = arith.constant 0 : index
    %c0_5 = arith.constant 0 : index
    %1 = vector.load %arg2[%c0_3, %c0_4, %c0_5] : memref<1x72x128xf32, #tpu.memory_space<vmem>>, vector<1x72x128xf32>
    %2 = vector.shape_cast %1 : vector<1x72x128xf32> to vector<72x128xf32>
    %cst = arith.constant dense<0.000000e+00> : vector<2x16x16x128xf32>
    %3 = tpu.matmul %0, %2, %cst {dimension_numbers = #tpu.dot_dimension_numbers<[3], [0], [0, 1, 2], [1], [0, 0, 0, 1, 0, 2, 1, 1], [], []>} : vector<2x16x16x72xf32>, vector<72x128xf32>, vector<2x16x16x128xf32> -> vector<2x16x16x128xf32>
    %cst_6 = arith.constant dense<0.000000e+00> : vector<128xf32>
    %4 = vector.multi_reduction <add>, %3, %cst_6 [0, 1, 2] : vector<2x16x16x128xf32> to vector<128xf32>
    %5 = vector.shape_cast %4 : vector<128xf32> to vector<1x1x1x128xf32>
    %6 = arith.mulf %3, %3 : vector<2x16x16x128xf32>
    %cst_7 = arith.constant dense<0.000000e+00> : vector<128xf32>
    %7 = vector.multi_reduction <add>, %6, %cst_7 [0, 1, 2] : vector<2x16x16x128xf32> to vector<128xf32>
    %8 = vector.shape_cast %7 : vector<128xf32> to vector<1x1x1x128xf32>
    %cst_8 = arith.constant 0.001953125 : f32
    %9 = vector.broadcast %cst_8 : f32 to vector<1x1x1x128xf32>
    %10 = arith.mulf %5, %9 : vector<1x1x1x128xf32>
    %cst_9 = arith.constant 0.001953125 : f32
    %11 = vector.broadcast %cst_9 : f32 to vector<1x1x1x128xf32>
    %12 = arith.mulf %8, %11 : vector<1x1x1x128xf32>
    %13 = arith.mulf %10, %10 : vector<1x1x1x128xf32>
    %14 = arith.subf %12, %13 : vector<1x1x1x128xf32>
    %cst_10 = arith.constant 0.000000e+00 : f32
    %15 = vector.broadcast %cst_10 : f32 to vector<1x1x1x128xf32>
    %16 = arith.maximumf %14, %15 : vector<1x1x1x128xf32>
    %c0_11 = arith.constant 0 : index
    %c0_12 = arith.constant 0 : index
    %17 = vector.load %arg3[%c0_11, %c0_12] : memref<1x128xf32, #tpu.memory_space<vmem>>, vector<1x128xf32>
    %18 = vector.shape_cast %17 : vector<1x128xf32> to vector<1x1x1x128xf32>
    %c0_13 = arith.constant 0 : index
    %c0_14 = arith.constant 0 : index
    %19 = vector.load %arg4[%c0_13, %c0_14] : memref<1x128xf32, #tpu.memory_space<vmem>>, vector<1x128xf32>
    %20 = vector.shape_cast %19 : vector<1x128xf32> to vector<1x1x1x128xf32>
    %cst_15 = arith.constant 9.99999974E-6 : f32
    %21 = vector.broadcast %cst_15 : f32 to vector<1x1x1x128xf32>
    %22 = arith.addf %16, %21 : vector<1x1x1x128xf32>
    %23 = math.rsqrt %22 : vector<1x1x1x128xf32>
    %24 = arith.mulf %23, %18 : vector<1x1x1x128xf32>
    %25 = arith.mulf %10, %24 : vector<1x1x1x128xf32>
    %26 = arith.subf %20, %25 : vector<1x1x1x128xf32>
    %27 = vector.broadcast %24 : vector<1x1x1x128xf32> to vector<2x16x16x128xf32>
    %28 = arith.mulf %3, %27 : vector<2x16x16x128xf32>
    %29 = vector.broadcast %26 : vector<1x1x1x128xf32> to vector<2x16x16x128xf32>
    %30 = arith.addf %28, %29 : vector<2x16x16x128xf32>
    %cst_16 = arith.constant 0.000000e+00 : f32
    %31 = vector.broadcast %cst_16 : f32 to vector<2x16x16x128xf32>
    %32 = arith.maximumf %30, %31 : vector<2x16x16x128xf32>
    %c0_17 = arith.constant 0 : index
    %c0_18 = arith.constant 0 : index
    %c0_19 = arith.constant 0 : index
    %c0_20 = arith.constant 0 : index
    %33 = vector.load %arg5[%c0_17, %c0_18, %c0_19, %c0_20] : memref<2x16x16x128xf32, #tpu.memory_space<vmem>>, vector<2x16x16x128xf32>
    tpu.vector_store %arg5[%c0_17, %c0_18, %c0_19, %c0_20], %32 {strides = array<i32>} : memref<2x16x16x128xf32, #tpu.memory_space<vmem>>, vector<2x16x16x128xf32>,
    return
  }
  func.func @transform_0(%arg0: i32) -> (i32, i32, i32, i32) {
    %c0_i32 = arith.constant 0 : i32
    %c0_i32_0 = arith.constant 0 : i32
    %c0_i32_1 = arith.constant 0 : i32
    %c0_i32_2 = arith.constant 0 : i32
    %c0_i32_3 = arith.constant 0 : i32
    return %c0_i32, %c0_i32_0, %c0_i32_1, %c0_i32_2 : i32, i32, i32, i32
  }
  func.func @transform_1(%arg0: i32) -> (i32, i32, i32) {
    %c0_i32 = arith.constant 0 : i32
    %c0_i32_0 = arith.constant 0 : i32
    %c0_i32_1 = arith.constant 0 : i32
    return %c0_i32, %c0_i32_0, %arg0 : i32, i32, i32
  }
  func.func @transform_2(%arg0: i32) -> (i32, i32) {
    %c0_i32 = arith.constant 0 : i32
    %c0_i32_0 = arith.constant 0 : i32
    return %c0_i32, %arg0 : i32, i32
  }
  func.func @transform_3(%arg0: i32) -> (i32, i32) {
    %c0_i32 = arith.constant 0 : i32
    %c0_i32_0 = arith.constant 0 : i32
    return %c0_i32, %arg0 : i32, i32
  }
  func.func @transform_4(%arg0: i32) -> (i32, i32, i32, i32) {
    %c0_i32 = arith.constant 0 : i32
    %c0_i32_0 = arith.constant 0 : i32
    %c0_i32_1 = arith.constant 0 : i32
    %c0_i32_2 = arith.constant 0 : i32
    return %c0_i32, %c0_i32_0, %c0_i32_1, %arg0 : i32, i32, i32, i32
  }
}

</mosaic_0001>

<bundles_post_ra>
// kernel: tpu_custom_call.1
= control target key start
LH: loop header
LB: loop body
LE: loop exit
PB: predicated region body
PF: predicated region fallthrough
CT: control target
= control target key end

     0   :  { %9 = vsyncpa [#allocation3], 0  ;;  %s2543_s0 = inlined_call_operand.hbm [shape: f32[2,16,16,72], index: 0, kind: input, shape index: {}]   ;;  %s2544_s1 = inlined_call_operand.hbm [shape: f32[1,72,128], index: 1, kind: input, shape index: {}]   ;;  %s2545_s2 = inlined_call_operand.vmem [shape: f32[1,128], index: 2, kind: input, shape index: {}]   ;;  %s2546_s3 = inlined_call_operand.vmem [shape: f32[1,128], index: 3, kind: input, shape index: {}]   ;;  %s2547_s4 = inlined_call_operand.hbm [shape: f32[2,16,16,128], index: 4, kind: output, shape index: {}]  }
   0x1   :  { %10 = vsyncpa [#allocation6], 0 }
   0x2   :  { %11 = vsyncpa [#allocation4], 0  ;;  %s1537_s15 = smov [#allocation2]  }
   0x3   :  { %s17_s16 = sshll.u32 %s1537_s15, 4  ;;  %s18_s16 = int_to_ptr.vmem [resolvable:$true] %s17_s16 }
   0x4   :  { %s1479_s17 = scalar_lea.vmem %s18_s16, 8192  ;;  %p1484_p1 = scmp.lt.s32.totalorder %s18_s16, %s18_s16 }
   0x5   :  { %p1480_p0 = scmp.ne.s32.totalorder %s18_s16, %s1479_s17  ;;  %p1485_p2 = scmp.lt.s32.totalorder %s1479_s17, %s1479_s17 }
   0x7   :  { %p1486_p3 = por %p1485_p2, %p1484_p1 }
   0x9   :  { %p1487_p4 = pnand %p1486_p3, %p1480_p0 }
   0xb   :  { %1490 = shalt.err (!%p1487_p4)
}
   0xc   :  { %s1538_s18 = smov 128   ;;  %s1539_s19 = smov 8  }
   0xd   :  { %23 = dma.hbm_to_vmem [thread:$0]  %s2543_s0, 8192, %s18_s16, [#allocation3], %s1538_s18, %s1538_s18, %s1539_s19  }
   0xe   :  { %s1540_s22 = smov [#allocation5]  }
   0xf   :  { %s29_s23 = sshll.u32 %s1540_s22, 4  ;;  %s30_s23 = int_to_ptr.vmem [resolvable:$true] %s29_s23 }
  0x10   :  { %s1499_s24 = scalar_lea.vmem %s30_s23, 1152  ;;  %p1504_p6 = scmp.lt.s32.totalorder %s30_s23, %s30_s23 }
  0x11   :  { %p1500_p5 = scmp.ne.s32.totalorder %s30_s23, %s1499_s24  ;;  %p1505_p7 = scmp.lt.s32.totalorder %s1499_s24, %s1499_s24 }
  0x13   :  { %p1506_p8 = por %p1505_p7, %p1504_p6 }
  0x15   :  { %p1507_p9 = pnand %p1506_p8, %p1500_p5 }
  0x17   :  { %1510 = shalt.err (!%p1507_p9)
}
  0x18   :  { %35 = dma.hbm_to_vmem [thread:$0]  %s2544_s1, 1152, %s30_s23, [#allocation6], %s1538_s18, %s1538_s18, %s1539_s19  }
  0x19   :  { %1531 = dma.done.wait [#allocation3], 8192  }
  0x1a   :  { %1532 = vsyncadd [#allocation3], 4294959104 }
  0x1b   :  { %1533 = dma.done.wait [#allocation6], 1152  }
  0x1c   :  { %1534 = vsyncadd [#allocation6], 4294966144  ;;  %v118_v0 = vld [vmem:[#allocation5 + $0x40] sm:$0xff]  ;;  %v117_v1 = vld [vmem:[#allocation5 + $0x38] sm:$0xff]  ;;  %vm119_vm0 = vcmask 588800  }
  0x1d   :  { %1332 = vmatprep.subr.mxu0 %v118_v0  ;;  %1446 = vmatprep.subr.mxu1 %v118_v0  ;;  %v116_v2 = vld [vmem:[#allocation5 + $0x30] sm:$0xff]  ;;  %v46_v3 = vld [vmem:[#allocation2] sm:$0xff]  ;;  %v115_v4 = vld [vmem:[#allocation5 + $0x28] sm:$0xff] }
  0x1e   :  { %1333 = vmatpush3.msra.mxu0 %v118_v0  ;;  %1455 = vmatpush3.msra.mxu1 %v118_v0  ;;  %v114_v5 = vld [vmem:[#allocation5 + $0x20] sm:$0xff]  ;;  %v113_v6 = vld [vmem:[#allocation5 + $0x18] sm:$0xff]  ;;  %v112_v7 = vld [vmem:[#allocation5 + $0x10] sm:$0xff] }
  0x1f   :  { %1334 = vmatprep.subr.mxu0 %v117_v1  ;;  %1447 = vmatprep.subr.mxu1 %v117_v1  ;;  %v111_v8 = vld [vmem:[#allocation5 + $0x8] sm:$0xff]  ;;  %v110_v9 = vld [vmem:[#allocation5] sm:$0xff]  ;;  %v48_v11 = vld [vmem:[#allocation2 + $0x10] sm:$0xff] }
  0x20   :  { %1335 = vmatpush3.msra.mxu0 %v117_v1  ;;  %1350 = vmatprep.mubr.msk.f32.mxu0 %vm119_vm0, %v46_v3  ;;  %v47_v10 = vld [vmem:[#allocation2 + $0x8] sm:$0xff]  ;;  %v78_v12 = vld [vmem:[#allocation2 + $0x100] sm:$0xff]  ;;  %v80_v14 = vld [vmem:[#allocation2 + $0x110] sm:$0xff] }
  0x21   :  { %1336 = vmatprep.subr.mxu0 %v116_v2  ;;  %1456 = vmatpush3.msra.mxu1 %v117_v1  ;;  %v79_v13 = vld [vmem:[#allocation2 + $0x108] sm:$0xff]  ;;  %v49_v15 = vld [vmem:[#allocation2 + $0x18] sm:$0xff]  ;;  %v50_v16 = vld [vmem:[#allocation2 + $0x20] sm:$0xff] }
  0x22   :  { %1337 = vmatpush3.msra.mxu0 %v116_v2  ;;  %1448 = vmatprep.subr.mxu1 %v116_v2  ;;  %v81_v17 = vld [vmem:[#allocation2 + $0x118] sm:$0xff]  ;;  %v82_v18 = vld [vmem:[#allocation2 + $0x120] sm:$0xff]  ;;  %v51_v19 = vld [vmem:[#allocation2 + $0x28] sm:$0xff] }
  0x23   :  { %1338 = vmatprep.subr.mxu0 %v115_v4  ;;  %1457 = vmatpush3.msra.mxu1 %v116_v2  ;;  %v52_v20 = vld [vmem:[#allocation2 + $0x30] sm:$0xff]  ;;  %v83_v21 = vld [vmem:[#allocation2 + $0x128] sm:$0xff]  ;;  %v53_v23 = vld [vmem:[#allocation2 + $0x38] sm:$0xff] }
  0x24   :  { %1339 = vmatpush3.msra.mxu0 %v115_v4  ;;  %1449 = vmatprep.subr.mxu1 %v115_v4  ;;  %v84_v22 = vld [vmem:[#allocation2 + $0x130] sm:$0xff]  ;;  %v54_v24 = vld [vmem:[#allocation2 + $0x40] sm:$0xff]  ;;  %v85_v25 = vld [vmem:[#allocation2 + $0x138] sm:$0xff] }
  0x25   :  { %1340 = vmatprep.subr.mxu0 %v114_v5  ;;  %1458 = vmatpush3.msra.mxu1 %v115_v4  ;;  %v86_v26 = vld [vmem:[#allocation2 + $0x140] sm:$0xff]  ;;  %v55_v27 = vld [vmem:[#allocation2 + $0x48] sm:$0xff]  ;;  %v56_v28 = vld [vmem:[#allocation2 + $0x50] sm:$0xff] }
  0x26   :  { %1341 = vmatpush3.msra.mxu0 %v114_v5  ;;  %1450 = vmatprep.subr.mxu1 %v114_v5  ;;  %v87_v29 = vld [vmem:[#allocation2 + $0x148] sm:$0xff]  ;;  %v88_v30 = vld [vmem:[#allocation2 + $0x150] sm:$0xff]  ;;  %v57_v31 = vld [vmem:[#allocation2 + $0x58] sm:$0xff] }
  0x27   :  { %1342 = vmatprep.subr.mxu0 %v113_v6  ;;  %1459 = vmatpush3.msra.mxu1 %v114_v5  ;;  %v58_v32 = vld [vmem:[#allocation2 + $0x60] sm:$0xff]  ;;  %v89_v33 = vld [vmem:[#allocation2 + $0x158] sm:$0xff]  ;;  %v59_v35 = vld [vmem:[#allocation2 + $0x68] sm:$0xff] }
  0x28   :  { %1343 = vmatpush3.msra.mxu0 %v113_v6  ;;  %1451 = vmatprep.subr.mxu1 %v113_v6  ;;  %v90_v34 = vld [vmem:[#allocation2 + $0x160] sm:$0xff]  ;;  %v60_v36 = vld [vmem:[#allocation2 + $0x70] sm:$0xff]  ;;  %v91_v37 = vld [vmem:[#allocation2 + $0x168] sm:$0xff] }
  0x29   :  { %1344 = vmatprep.subr.mxu0 %v112_v7  ;;  %1460 = vmatpush3.msra.mxu1 %v113_v6  ;;  %v92_v38 = vld [vmem:[#allocation2 + $0x170] sm:$0xff]  ;;  %v61_v39 = vld [vmem:[#allocation2 + $0x78] sm:$0xff]  ;;  %v62_v40 = vld [vmem:[#allocation2 + $0x80] sm:$0xff] }
  0x2a   :  { %1345 = vmatpush3.msra.mxu0 %v112_v7  ;;  %1452 = vmatprep.subr.mxu1 %v112_v7  ;;  %v93_v41 = vld [vmem:[#allocation2 + $0x178] sm:$0xff]  ;;  %v94_v42 = vld [vmem:[#allocation2 + $0x180] sm:$0xff]  ;;  %v63_v43 = vld [vmem:[#allocation2 + $0x88] sm:$0xff] }
  0x2b   :  { %1346 = vmatprep.subr.mxu0 %v111_v8  ;;  %1461 = vmatpush3.msra.mxu1 %v112_v7  ;;  %v64_v44 = vld [vmem:[#allocation2 + $0x90] sm:$0xff]  ;;  %v95_v45 = vld [vmem:[#allocation2 + $0x188] sm:$0xff]  ;;  %v65_v47 = vld [vmem:[#allocation2 + $0x98] sm:$0xff] }
  0x2c   :  { %1347 = vmatpush3.msra.mxu0 %v111_v8  ;;  %1453 = vmatprep.subr.mxu1 %v111_v8  ;;  %v96_v46 = vld [vmem:[#allocation2 + $0x190] sm:$0xff]  ;;  %v66_v48 = vld [vmem:[#allocation2 + $0xa0] sm:$0xff]  ;;  %v97_v49 = vld [vmem:[#allocation2 + $0x198] sm:$0xff] }
  0x2d   :  { %1348 = vmatprep.subr.mxu0 %v110_v9  ;;  %1462 = vmatpush3.msra.mxu1 %v111_v8  ;;  %v98_v50 = vld [vmem:[#allocation2 + $0x1a0] sm:$0xff]  ;;  %v67_v51 = vld [vmem:[#allocation2 + $0xa8] sm:$0xff]  ;;  %v68_v52 = vld [vmem:[#allocation2 + $0xb0] sm:$0xff] }
  0x2e   :  { %1349 = vmatpush3.msra.mxu0 %v110_v9  ;;  %1454 = vmatprep.subr.mxu1 %v110_v9  ;;  %v99_v53 = vld [vmem:[#allocation2 + $0x1a8] sm:$0xff]  ;;  %v100_v54 = vld [vmem:[#allocation2 + $0x1b0] sm:$0xff]  ;;  %v69_v55 = vld [vmem:[#allocation2 + $0xb8] sm:$0xff] }
  0x2f   :  { %1351 = vmatmul.mubr.msk.f32.vlgmr.msra.gmra.mxu0 %vm119_vm0, %v47_v10  ;;  %1463 = vmatpush3.msra.mxu1 %v110_v9  ;;  %v70_v56 = vld [vmem:[#allocation2 + $0xc0] sm:$0xff]  ;;  %v101_v57 = vld [vmem:[#allocation2 + $0x1b8] sm:$0xff]  ;;  %v71_v59 = vld [vmem:[#allocation2 + $0xc8] sm:$0xff] }
  0x30   :  { %1353 = vmatprep.mubr.msk.f32.mxu0 %vm119_vm0, %v48_v11  ;;  %1398 = vmatprep.mubr.msk.f32.mxu1 %vm119_vm0, %v78_v12  ;;  %v102_v58 = vld [vmem:[#allocation2 + $0x1c0] sm:$0xff]  ;;  %v72_v60 = vld [vmem:[#allocation2 + $0xd0] sm:$0xff]  ;;  %v103_v61 = vld [vmem:[#allocation2 + $0x1c8] sm:$0xff] }
  0x31   :  { %1399 = vmatmul.mubr.msk.f32.vlgmr.msra.gmra.mxu1 %vm119_vm0, %v79_v13  ;;  %v104_v62 = vld [vmem:[#allocation2 + $0x1d0] sm:$0xff]  ;;  %v73_v63 = vld [vmem:[#allocation2 + $0xd8] sm:$0xff]  ;;  %v74_v0 = vld [vmem:[#allocation2 + $0xe0] sm:$0xff] }
  0x32   :  { %1401 = vmatprep.mubr.msk.f32.mxu1 %vm119_vm0, %v80_v14  ;;  %v105_v1 = vld [vmem:[#allocation2 + $0x1d8] sm:$0xff]  ;;  %v106_v2 = vld [vmem:[#allocation2 + $0x1e0] sm:$0xff]  ;;  %v75_v3 = vld [vmem:[#allocation2 + $0xe8] sm:$0xff] }
  0x33   :  { %1354 = vmatmul.mubr.msk.f32.gmra.mxu0 %vm119_vm0, %v49_v15  ;;  %v76_v4 = vld [vmem:[#allocation2 + $0xf0] sm:$0xff]  ;;  %v107_v5 = vld [vmem:[#allocation2 + $0x1e8] sm:$0xff]  ;;  %v77_v7 = vld [vmem:[#allocation2 + $0xf8] sm:$0xff] }
  0x34   :  { %1356 = vmatprep.mubr.msk.f32.mxu0 %vm119_vm0, %v50_v16  ;;  %v108_v6 = vld [vmem:[#allocation2 + $0x1f0] sm:$0xff]  ;;  %v109_v8 = vld [vmem:[#allocation2 + $0x1f8] sm:$0xff] }
  0x35   :  { %1402 = vmatmul.mubr.msk.f32.gmra.mxu1 %vm119_vm0, %v81_v17 }
  0x36   :  { %1404 = vmatprep.mubr.msk.f32.mxu1 %vm119_vm0, %v82_v18 }
  0x37   :  { %1357 = vmatmul.mubr.msk.f32.gmra.mxu0 %vm119_vm0, %v51_v19 }
  0x38   :  { %1359 = vmatprep.mubr.msk.f32.mxu0 %vm119_vm0, %v52_v20 }
  0x39   :  { %1405 = vmatmul.mubr.msk.f32.gmra.mxu1 %vm119_vm0, %v83_v21 }
  0x3a   :  { %1407 = vmatprep.mubr.msk.f32.mxu1 %vm119_vm0, %v84_v22 }
  0x3b   :  { %1360 = vmatmul.mubr.msk.f32.gmra.mxu0 %vm119_vm0, %v53_v23 }
  0x3c   :  { %1362 = vmatprep.mubr.msk.f32.mxu0 %vm119_vm0, %v54_v24 }
  0x3d   :  { %1408 = vmatmul.mubr.msk.f32.gmra.mxu1 %vm119_vm0, %v85_v25 }
  0x3e   :  { %1410 = vmatprep.mubr.msk.f32.mxu1 %vm119_vm0, %v86_v26 }
  0x3f   :  { %1363 = vmatmul.mubr.msk.f32.gmra.mxu0 %vm119_vm0, %v55_v27 }
  0x40   :  { %1365 = vmatprep.mubr.msk.f32.mxu0 %vm119_vm0, %v56_v28 }
  0x41   :  { %1411 = vmatmul.mubr.msk.f32.gmra.mxu1 %vm119_vm0, %v87_v29 }
  0x42   :  { %1413 = vmatprep.mubr.msk.f32.mxu1 %vm119_vm0, %v88_v30 }
  0x43   :  { %1366 = vmatmul.mubr.msk.f32.gmra.mxu0 %vm119_vm0, %v57_v31 }
  0x44   :  { %1368 = vmatprep.mubr.msk.f32.mxu0 %vm119_vm0, %v58_v32 }
  0x45   :  { %1414 = vmatmul.mubr.msk.f32.gmra.mxu1 %vm119_vm0, %v89_v33 }
  0x46   :  { %1416 = vmatprep.mubr.msk.f32.mxu1 %vm119_vm0, %v90_v34 }
  0x47   :  { %1369 = vmatmul.mubr.msk.f32.gmra.mxu0 %vm119_vm0, %v59_v35 }
  0x48   :  { %1371 = vmatprep.mubr.msk.f32.mxu0 %vm119_vm0, %v60_v36 }
  0x49   :  { %1417 = vmatmul.mubr.msk.f32.gmra.mxu1 %vm119_vm0, %v91_v37 }
  0x4a   :  { %1419 = vmatprep.mubr.msk.f32.mxu1 %vm119_vm0, %v92_v38 }
  0x4b   :  { %1372 = vmatmul.mubr.msk.f32.gmra.mxu0 %vm119_vm0, %v61_v39 }
  0x4c   :  { %1374 = vmatprep.mubr.msk.f32.mxu0 %vm119_vm0, %v62_v40 }
  0x4d   :  { %1420 = vmatmul.mubr.msk.f32.gmra.mxu1 %vm119_vm0, %v93_v41 }
  0x4e   :  { %1422 = vmatprep.mubr.msk.f32.mxu1 %vm119_vm0, %v94_v42 }
  0x4f   :  { %1375 = vmatmul.mubr.msk.f32.gmra.mxu0 %vm119_vm0, %v63_v43 }
  0x50   :  { %1377 = vmatprep.mubr.msk.f32.mxu0 %vm119_vm0, %v64_v44 }
  0x51   :  { %1423 = vmatmul.mubr.msk.f32.gmra.mxu1 %vm119_vm0, %v95_v45 }
  0x52   :  { %1425 = vmatprep.mubr.msk.f32.mxu1 %vm119_vm0, %v96_v46 }
  0x53   :  { %1378 = vmatmul.mubr.msk.f32.gmra.mxu0 %vm119_vm0, %v65_v47 }
  0x54   :  { %1380 = vmatprep.mubr.msk.f32.mxu0 %vm119_vm0, %v66_v48 }
  0x55   :  { %1426 = vmatmul.mubr.msk.f32.gmra.mxu1 %vm119_vm0, %v97_v49 }
  0x56   :  { %1428 = vmatprep.mubr.msk.f32.mxu1 %vm119_vm0, %v98_v50 }
  0x57   :  { %1381 = vmatmul.mubr.msk.f32.gmra.mxu0 %vm119_vm0, %v67_v51 }
  0x58   :  { %1383 = vmatprep.mubr.msk.f32.mxu0 %vm119_vm0, %v68_v52 }
  0x59   :  { %1429 = vmatmul.mubr.msk.f32.gmra.mxu1 %vm119_vm0, %v99_v53 }
  0x5a   :  { %1431 = vmatprep.mubr.msk.f32.mxu1 %vm119_vm0, %v100_v54 }
  0x5b   :  { %1384 = vmatmul.mubr.msk.f32.gmra.mxu0 %vm119_vm0, %v69_v55 }
  0x5c   :  { %1386 = vmatprep.mubr.msk.f32.mxu0 %vm119_vm0, %v70_v56 }
  0x5d   :  { %1432 = vmatmul.mubr.msk.f32.gmra.mxu1 %vm119_vm0, %v101_v57 }
  0x5e   :  { %1434 = vmatprep.mubr.msk.f32.mxu1 %vm119_vm0, %v102_v58 }
  0x5f   :  { %1387 = vmatmul.mubr.msk.f32.gmra.mxu0 %vm119_vm0, %v71_v59 }
  0x60   :  { %1389 = vmatprep.mubr.msk.f32.mxu0 %vm119_vm0, %v72_v60 }
  0x61   :  { %1435 = vmatmul.mubr.msk.f32.gmra.mxu1 %vm119_vm0, %v103_v61 }
  0x62   :  { %1437 = vmatprep.mubr.msk.f32.mxu1 %vm119_vm0, %v104_v62 }
  0x63   :  { %1390 = vmatmul.mubr.msk.f32.gmra.mxu0 %vm119_vm0, %v73_v63 }
  0x64   :  { %1392 = vmatprep.mubr.msk.f32.mxu0 %vm119_vm0, %v74_v0 }
  0x65   :  { %1438 = vmatmul.mubr.msk.f32.gmra.mxu1 %vm119_vm0, %v105_v1 }
  0x66   :  { %1440 = vmatprep.mubr.msk.f32.mxu1 %vm119_vm0, %v106_v2 }
  0x67   :  { %1393 = vmatmul.mubr.msk.f32.gmra.mxu0 %vm119_vm0, %v75_v3 }
  0x68   :  { %1395 = vmatprep.mubr.msk.f32.mxu0 %vm119_vm0, %v76_v4 }
  0x69   :  { %1441 = vmatmul.mubr.msk.f32.gmra.mxu1 %vm119_vm0, %v107_v5 }
  0x6a   :  { %1443 = vmatprep.mubr.msk.f32.mxu1 %vm119_vm0, %v108_v6 }
  0x6b   :  { %1396 = vmatmul.mubr.msk.f32.gmra.mxu0 %vm119_vm0, %v77_v7 }
  0x6d   :  { %1444 = vmatmul.mubr.msk.f32.gmra.mxu1 %vm119_vm0, %v109_v8 }
  0xef   :  { %v1643_v9 = vpop.f32.mrf.mxu0 }
  0xf0   :  { %v767_v15 = vmul.f32 %v1643_v9, %v1643_v9 }
  0xf1   :  { %v1645_v10 = vpop.f32.mrf.mxu0  ;;  %v1647_v11 = vpop.f32.mrf.mxu1 }
  0xf2   :  { %v766_v12 = vmul.f32 %v1645_v10, %v1645_v10  ;;  %v697_v16 = vadd.f32 %v1643_v9, %v1645_v10 }
  0xf3   :  { %v1651_v13 = vpop.f32.mrf.mxu0  ;;  %v1653_v14 = vpop.f32.mrf.mxu1 }
  0xf4   :  { %v830_v18 = vadd.f32 %v767_v15, %v766_v12  ;;  %v769_v23 = vmul.f32 %v1651_v13, %v1651_v13 }
  0xf5   :  { %v1659_v17 = vpop.f32.mrf.mxu0  ;;  %v1666_v22 = vpop.f32.mrf.mxu1 }
  0xf6   :  { %v698_v19 = vadd.f32 %v697_v16, %v1659_v17  ;;  %v768_v20 = vmul.f32 %v1659_v17, %v1659_v17 }
  0xf7   :  { %v1664_v21 = vpop.f32.mrf.mxu0  ;;  %v1678_v31 = vpop.f32.mrf.mxu1 }
  0xf8   :  { %v831_v24 = vadd.f32 %v830_v18, %v768_v20  ;;  %v699_v25 = vadd.f32 %v1651_v13, %v698_v19  ;;  %2572 = vst [vmem:[#allocation11_spill] sm:$0xff] %v1678_v31  ;;  %v771_v32 = vmul.f32 %v1664_v21, %v1664_v21 }
  0xf9   :  { %v1671_v26 = vpop.f32.mrf.mxu0  ;;  %v1690_v40 = vpop.f32.mrf.mxu1 }
  0xfa   :  { %v700_v27 = vadd.f32 %v699_v25, %v1671_v26  ;;  %v770_v28 = vmul.f32 %v1671_v26, %v1671_v26  ;;  %v832_v29 = vadd.f32 %v831_v24, %v769_v23 }
  0xfb   :  { %v1676_v30 = vpop.f32.mrf.mxu0  ;;  %v1702_v49 = vpop.f32.mrf.mxu1 }
  0xfc   :  { %v833_v33 = vadd.f32 %v832_v29, %v770_v28  ;;  %v701_v34 = vadd.f32 %v1664_v21, %v700_v27  ;;  %v773_v41 = vmul.f32 %v1676_v30, %v1676_v30  ;;  %2573 = vst [vmem:[#allocation12_spill] sm:$0xff] %v1702_v49 }
  0xfd   :  { %v1683_v35 = vpop.f32.mrf.mxu0  ;;  %v1714_v58 = vpop.f32.mrf.mxu1 }
  0xfe   :  { %v702_v36 = vadd.f32 %v701_v34, %v1683_v35  ;;  %v772_v37 = vmul.f32 %v1683_v35, %v1683_v35  ;;  %v834_v38 = vadd.f32 %v833_v33, %v771_v32 }
  0xff   :  { %v1688_v39 = vpop.f32.mrf.mxu0  ;;  %v1726_v3 = vpop.f32.mrf.mxu1 }
 0x100   :  { %v835_v42 = vadd.f32 %v834_v38, %v772_v37  ;;  %v703_v43 = vadd.f32 %v1676_v30, %v702_v36  ;;  %v775_v50 = vmul.f32 %v1688_v39, %v1688_v39  ;;  %2574 = vst [vmem:[#allocation13_spill] sm:$0xff] %v1726_v3 }
 0x101   :  { %v1695_v44 = vpop.f32.mrf.mxu0  ;;  %v1738_v18 = vpop.f32.mrf.mxu1 }
 0x102   :  { %v704_v45 = vadd.f32 %v703_v43, %v1695_v44  ;;  %v774_v46 = vmul.f32 %v1695_v44, %v1695_v44  ;;  %v836_v47 = vadd.f32 %v835_v42, %v773_v41 }
 0x103   :  { %v1700_v48 = vpop.f32.mrf.mxu0  ;;  %v1750_v32 = vpop.f32.mrf.mxu1 }
 0x104   :  { %v837_v51 = vadd.f32 %v836_v47, %v774_v46  ;;  %v705_v52 = vadd.f32 %v1688_v39, %v704_v45  ;;  %v777_v59 = vmul.f32 %v1700_v48, %v1700_v48  ;;  %2575 = vst [vmem:[#allocation14_spill] sm:$0xff] %v1750_v32 }
 0x105   :  { %v1707_v53 = vpop.f32.mrf.mxu0  ;;  %v1762_v45 = vpop.f32.mrf.mxu1 }
 0x106   :  { %v706_v54 = vadd.f32 %v705_v52, %v1707_v53  ;;  %v776_v55 = vmul.f32 %v1707_v53, %v1707_v53  ;;  %v838_v56 = vadd.f32 %v837_v51, %v775_v50  ;;  %2576 = vst [vmem:[#allocation15_spill] sm:$0xff] %v1762_v45 }
 0x107   :  { %v1712_v57 = vpop.f32.mrf.mxu0 }
 0x108   :  { %v839_v60 = vadd.f32 %v838_v56, %v776_v55  ;;  %v707_v61 = vadd.f32 %v1700_v48, %v706_v54  ;;  %v779_v4 = vmul.f32 %v1712_v57, %v1712_v57 }
 0x109   :  { %v1719_v62 = vpop.f32.mrf.mxu0 }
 0x10a   :  { %v708_v63 = vadd.f32 %v707_v61, %v1719_v62  ;;  %v778_v0 = vmul.f32 %v1719_v62, %v1719_v62  ;;  %v840_v1 = vadd.f32 %v839_v60, %v777_v59  ;;  %v1774_v59 = vpop.f32.mrf.mxu1 }
 0x10b   :  { %v1724_v2 = vpop.f32.mrf.mxu0  ;;  %2577 = vst [vmem:[#allocation16_spill] sm:$0xff] %v1774_v59 }
 0x10c   :  { %v841_v5 = vadd.f32 %v840_v1, %v778_v0  ;;  %v709_v6 = vadd.f32 %v1712_v57, %v708_v63  ;;  %v781_v19 = vmul.f32 %v1724_v2, %v1724_v2 }
 0x10d   :  { %v1731_v7 = vpop.f32.mrf.mxu0 }
 0x10e   :  { %v710_v8 = vadd.f32 %v709_v6, %v1731_v7  ;;  %v780_v12 = vmul.f32 %v1731_v7, %v1731_v7  ;;  %v842_v15 = vadd.f32 %v841_v5, %v779_v4 }
 0x10f   :  { %v1736_v16 = vpop.f32.mrf.mxu0 }
 0x110   :  { %v843_v20 = vadd.f32 %v842_v15, %v780_v12  ;;  %v711_v23 = vadd.f32 %v1724_v2, %v710_v8  ;;  %v783_v33 = vmul.f32 %v1736_v16, %v1736_v16  ;;  %v1786_v8 = vpop.f32.mrf.mxu1 }
 0x111   :  { %v1743_v24 = vpop.f32.mrf.mxu0  ;;  %2578 = vst [vmem:[#allocation17_spill] sm:$0xff] %v1786_v8 }
 0x112   :  { %v712_v25 = vadd.f32 %v711_v23, %v1743_v24  ;;  %v782_v27 = vmul.f32 %v1743_v24, %v1743_v24  ;;  %v844_v28 = vadd.f32 %v843_v20, %v781_v19 }
 0x113   :  { %v1748_v29 = vpop.f32.mrf.mxu0 }
 0x114   :  { %v845_v34 = vadd.f32 %v844_v28, %v782_v27  ;;  %v713_v36 = vadd.f32 %v1736_v16, %v712_v25  ;;  %v785_v46 = vmul.f32 %v1748_v29, %v1748_v29 }
 0x115   :  { %v1755_v37 = vpop.f32.mrf.mxu0 }
 0x116   :  { %v714_v38 = vadd.f32 %v713_v36, %v1755_v37  ;;  %v784_v41 = vmul.f32 %v1755_v37, %v1755_v37  ;;  %v846_v42 = vadd.f32 %v845_v34, %v783_v33  ;;  %v1798_v33 = vpop.f32.mrf.mxu1 }
 0x117   :  { %v1760_v43 = vpop.f32.mrf.mxu0  ;;  %2579 = vst [vmem:[#allocation18_spill] sm:$0xff] %v1798_v33 }
 0x118   :  { %v847_v47 = vadd.f32 %v846_v42, %v784_v41  ;;  %v715_v50 = vadd.f32 %v1748_v29, %v714_v38  ;;  %v787_v60 = vmul.f32 %v1760_v43, %v1760_v43 }
 0x119   :  { %v1767_v51 = vpop.f32.mrf.mxu0 }
 0x11a   :  { %v716_v52 = vadd.f32 %v715_v50, %v1767_v51  ;;  %v786_v54 = vmul.f32 %v1767_v51, %v1767_v51  ;;  %v848_v55 = vadd.f32 %v847_v47, %v785_v46 }
 0x11b   :  { %v1772_v56 = vpop.f32.mrf.mxu0 }
 0x11c   :  { %v849_v61 = vadd.f32 %v848_v55, %v786_v54  ;;  %v717_v63 = vadd.f32 %v1760_v43, %v716_v52  ;;  %v789_v12 = vmul.f32 %v1772_v56, %v1772_v56  ;;  %v1810_v52 = vpop.f32.mrf.mxu1 }
 0x11d   :  { %v1779_v0 = vpop.f32.mrf.mxu0  ;;  %2580 = vst [vmem:[#allocation19_spill] sm:$0xff] %v1810_v52 }
 0x11e   :  { %v718_v1 = vadd.f32 %v717_v63, %v1779_v0  ;;  %v788_v4 = vmul.f32 %v1779_v0, %v1779_v0  ;;  %v850_v5 = vadd.f32 %v849_v61, %v787_v60 }
 0x11f   :  { %v1784_v6 = vpop.f32.mrf.mxu0 }
 0x120   :  { %v851_v15 = vadd.f32 %v850_v5, %v788_v4  ;;  %v719_v19 = vadd.f32 %v1772_v56, %v718_v1  ;;  %v791_v34 = vmul.f32 %v1784_v6, %v1784_v6 }
 0x121   :  { %v1791_v20 = vpop.f32.mrf.mxu0 }
 0x122   :  { %v720_v23 = vadd.f32 %v719_v19, %v1791_v20  ;;  %v790_v25 = vmul.f32 %v1791_v20, %v1791_v20  ;;  %v852_v27 = vadd.f32 %v851_v15, %v789_v12  ;;  %v1822_v12 = vpop.f32.mrf.mxu1 }
 0x123   :  { %v1796_v28 = vpop.f32.mrf.mxu0  ;;  %2581 = vst [vmem:[#allocation20_spill] sm:$0xff] %v1822_v12 }
 0x124   :  { %v853_v36 = vadd.f32 %v852_v27, %v790_v25  ;;  %v721_v38 = vadd.f32 %v1784_v6, %v720_v23  ;;  %v793_v54 = vmul.f32 %v1796_v28, %v1796_v28 }
 0x125   :  { %v1803_v41 = vpop.f32.mrf.mxu0 }
 0x126   :  { %v722_v42 = vadd.f32 %v721_v38, %v1803_v41  ;;  %v792_v46 = vmul.f32 %v1803_v41, %v1803_v41  ;;  %v854_v47 = vadd.f32 %v853_v36, %v791_v34  ;;  %v1832_v38 = vpop.f32.mrf.mxu1 }
 0x127   :  { %v1808_v50 = vpop.f32.mrf.mxu0  ;;  %2582 = vst [vmem:[#allocation21_spill] sm:$0xff] %v1832_v38 }
 0x128   :  { %v855_v55 = vadd.f32 %v854_v47, %v792_v46  ;;  %v723_v60 = vadd.f32 %v1796_v28, %v722_v42  ;;  %v795_v15 = vmul.f32 %v1808_v50, %v1808_v50 }
 0x129   :  { %v1815_v61 = vpop.f32.mrf.mxu0 }
 0x12a   :  { %v724_v63 = vadd.f32 %v723_v60, %v1815_v61  ;;  %v794_v1 = vmul.f32 %v1815_v61, %v1815_v61  ;;  %v856_v4 = vadd.f32 %v855_v55, %v793_v54  ;;  %v798_v60 = vmul.f32 %v1653_v14, %v1653_v14 }
 0x12b   :  { %v1820_v5 = vpop.f32.mrf.mxu0 }
 0x12c   :  { %v857_v19 = vadd.f32 %v856_v4, %v794_v1  ;;  %v725_v23 = vadd.f32 %v1808_v50, %v724_v63  ;;  %v797_v42 = vmul.f32 %v1820_v5, %v1820_v5  ;;  %v1840_v63 = vpop.f32.mrf.mxu1  ;;  %v799_v1 = vmul.f32 %v1647_v11, %v1647_v11 }
 0x12d   :  { %v1827_v25 = vpop.f32.mrf.mxu0  ;;  %2583 = vst [vmem:[#allocation22_spill] sm:$0xff] %v1840_v63 }
 0x12e   :  { %v726_v27 = vadd.f32 %v725_v23, %v1827_v25  ;;  %v796_v34 = vmul.f32 %v1827_v25, %v1827_v25  ;;  %v858_v36 = vadd.f32 %v857_v19, %v795_v15  ;;  %v800_v23 = vmul.f32 %v1678_v31, %v1678_v31 }
 0x130   :  { %v727_v46 = vadd.f32 %v1820_v5, %v726_v27  ;;  %v859_v47 = vadd.f32 %v858_v36, %v796_v34  ;;  %v1848_v34 = vpop.f32.mrf.mxu1  ;;  %v801_v36 = vmul.f32 %v1666_v22, %v1666_v22 }
 0x131   :  { %2584 = vst [vmem:[#allocation23_spill] sm:$0xff] %v1848_v34 }
 0x132   :  { %v860_v54 = vadd.f32 %v859_v47, %v797_v42  ;;  %v728_v55 = vadd.f32 %v727_v46, %v1653_v14 }
 0x134   :  { %v861_v4 = vadd.f32 %v860_v54, %v798_v60  ;;  %v729_v15 = vadd.f32 %v1647_v11, %v728_v55  ;;  %v802_v54 = vmul.f32 %v1702_v49, %v1702_v49  ;;  %v1856_v60 = vpop.f32.mrf.mxu1 }
 0x135   :  { %2585 = vst [vmem:[#allocation24_spill] sm:$0xff] %v1856_v60 }
 0x136   :  { %v730_v19 = vadd.f32 %v729_v15, %v1678_v31  ;;  %v862_v27 = vadd.f32 %v861_v4, %v799_v1  ;;  %v803_v15 = vmul.f32 %v1690_v40, %v1690_v40 }
 0x138   :  { %v863_v42 = vadd.f32 %v862_v27, %v800_v23  ;;  %v731_v46 = vadd.f32 %v1666_v22, %v730_v19  ;;  %v804_v23 = vmul.f32 %v1726_v3, %v1726_v3  ;;  %v1864_v27 = vpop.f32.mrf.mxu1 }
 0x139   :  { %2586 = vst [vmem:[#allocation25_spill] sm:$0xff] %v1864_v27 }
 0x13a   :  { %v732_v47 = vadd.f32 %v731_v46, %v1702_v49  ;;  %v864_v55 = vadd.f32 %v863_v42, %v801_v36  ;;  %v805_v46 = vmul.f32 %v1714_v58, %v1714_v58 }
 0x13c   :  { %v865_v1 = vadd.f32 %v864_v55, %v802_v54  ;;  %v733_v4 = vadd.f32 %v1690_v40, %v732_v47  ;;  %v806_v54 = vmul.f32 %v1750_v32, %v1750_v32  ;;  %v1872_v55 = vpop.f32.mrf.mxu1 }
 0x13d   :  { %2587 = vst [vmem:[#allocation26_spill] sm:$0xff] %v1872_v55 }
 0x13e   :  { %v734_v31 = vadd.f32 %v733_v4, %v1726_v3  ;;  %v866_v19 = vadd.f32 %v865_v1, %v803_v15  ;;  %v807_v4 = vmul.f32 %v1738_v18, %v1738_v18 }
 0x140   :  { %v867_v36 = vadd.f32 %v866_v19, %v804_v23  ;;  %v735_v42 = vadd.f32 %v1714_v58, %v734_v31  ;;  %v808_v23 = vmul.f32 %v1774_v59, %v1774_v59  ;;  %v1880_v19 = vpop.f32.mrf.mxu1 }
 0x141   :  { %2588 = vst [vmem:[#allocation27_spill] sm:$0xff] %v1880_v19 }
 0x142   :  { %v736_v49 = vadd.f32 %v735_v42, %v1750_v32  ;;  %v868_v47 = vadd.f32 %v867_v36, %v805_v46  ;;  %v809_v42 = vmul.f32 %v1762_v45, %v1762_v45 }
 0x144   :  { %v869_v15 = vadd.f32 %v868_v47, %v806_v54  ;;  %v737_v1 = vadd.f32 %v1738_v18, %v736_v49  ;;  %v810_v54 = vmul.f32 %v1798_v33, %v1798_v33  ;;  %v1888_v47 = vpop.f32.mrf.mxu1 }
 0x145   :  { %2589 = vst [vmem:[#allocation28_spill] sm:$0xff] %v1888_v47 }
 0x146   :  { %v738_v3 = vadd.f32 %v737_v1, %v1774_v59  ;;  %v870_v31 = vadd.f32 %v869_v15, %v807_v4  ;;  %v811_v1 = vmul.f32 %v1786_v8, %v1786_v8 }
 0x148   :  { %v871_v46 = vadd.f32 %v870_v31, %v808_v23  ;;  %v739_v36 = vadd.f32 %v1762_v45, %v738_v3  ;;  %v812_v23 = vmul.f32 %v1822_v12, %v1822_v12  ;;  %v1896_v31 = vpop.f32.mrf.mxu1 }
 0x149   :  { %2590 = vst [vmem:[#allocation29_spill] sm:$0xff] %v1896_v31 }
 0x14a   :  { %v740_v32 = vadd.f32 %v739_v36, %v1798_v33  ;;  %v872_v49 = vadd.f32 %v871_v46, %v809_v42  ;;  %v813_v36 = vmul.f32 %v1810_v52, %v1810_v52 }
 0x14c   :  { %v873_v4 = vadd.f32 %v872_v49, %v810_v54  ;;  %v741_v15 = vadd.f32 %v1786_v8, %v740_v32  ;;  %v814_v54 = vmul.f32 %v1840_v63, %v1840_v63  ;;  %v1904_v49 = vpop.f32.mrf.mxu1 }
 0x14d   :  { %2591 = vst [vmem:[#allocation30_spill] sm:$0xff] %v1904_v49 }
 0x14e   :  { %v742_v59 = vadd.f32 %v741_v15, %v1822_v12  ;;  %v874_v3 = vadd.f32 %v873_v4, %v811_v1  ;;  %v815_v15 = vmul.f32 %v1832_v38, %v1832_v38 }
 0x150   :  { %v875_v42 = vadd.f32 %v874_v3, %v812_v23  ;;  %v743_v46 = vadd.f32 %v1810_v52, %v742_v59  ;;  %v816_v23 = vmul.f32 %v1856_v60, %v1856_v60  ;;  %v1912_v3 = vpop.f32.mrf.mxu1 }
 0x151   :  { %2592 = vst [vmem:[#allocation31_spill] sm:$0xff] %v1912_v3 }
 0x152   :  { %v744_v33 = vadd.f32 %v743_v46, %v1840_v63  ;;  %v876_v32 = vadd.f32 %v875_v42, %v813_v36  ;;  %v817_v46 = vmul.f32 %v1848_v34, %v1848_v34 }
 0x154   :  { %v877_v1 = vadd.f32 %v876_v32, %v814_v54  ;;  %v745_v4 = vadd.f32 %v1832_v38, %v744_v33  ;;  %v818_v54 = vmul.f32 %v1872_v55, %v1872_v55  ;;  %v1920_v32 = vpop.f32.mrf.mxu1 }
 0x155   :  { %2593 = vst [vmem:[#allocation32_spill] sm:$0xff] %v1920_v32 }
 0x156   :  { %v746_v12 = vadd.f32 %v745_v4, %v1856_v60  ;;  %v878_v59 = vadd.f32 %v877_v1, %v815_v15  ;;  %v819_v4 = vmul.f32 %v1864_v27, %v1864_v27 }
 0x158   :  { %v879_v36 = vadd.f32 %v878_v59, %v816_v23  ;;  %v747_v42 = vadd.f32 %v1848_v34, %v746_v12  ;;  %v820_v23 = vmul.f32 %v1888_v47, %v1888_v47  ;;  %v1928_v59 = vpop.f32.mrf.mxu1 }
 0x159   :  { %2594 = vst [vmem:[#allocation33_spill] sm:$0xff] %v1928_v59 }
 0x15a   :  { %v748_v63 = vadd.f32 %v747_v42, %v1872_v55  ;;  %v880_v33 = vadd.f32 %v879_v36, %v817_v46  ;;  %v821_v42 = vmul.f32 %v1880_v19, %v1880_v19 }
 0x15c   :  { %v881_v15 = vadd.f32 %v880_v33, %v818_v54  ;;  %v749_v1 = vadd.f32 %v1864_v27, %v748_v63  ;;  %v822_v54 = vmul.f32 %v1904_v49, %v1904_v49  ;;  %v1936_v33 = vpop.f32.mrf.mxu1 }
 0x15d   :  { %2595 = vst [vmem:[#allocation34_spill] sm:$0xff] %v1936_v33 }
 0x15e   :  { %v750_v60 = vadd.f32 %v749_v1, %v1888_v47  ;;  %v882_v12 = vadd.f32 %v881_v15, %v819_v4  ;;  %v823_v1 = vmul.f32 %v1896_v31, %v1896_v31 }
 0x160   :  { %v883_v46 = vadd.f32 %v882_v12, %v820_v23  ;;  %v751_v36 = vadd.f32 %v1880_v19, %v750_v60  ;;  %v824_v23 = vmul.f32 %v1920_v32, %v1920_v32  ;;  %v1944_v12 = vpop.f32.mrf.mxu1 }
 0x162   :  { %v752_v55 = vadd.f32 %v751_v36, %v1904_v49  ;;  %v884_v63 = vadd.f32 %v883_v46, %v821_v42  ;;  %v825_v36 = vmul.f32 %v1912_v3, %v1912_v3 }
 0x164   :  { %v885_v4 = vadd.f32 %v884_v63, %v822_v54  ;;  %v753_v15 = vadd.f32 %v1896_v31, %v752_v55  ;;  %v826_v54 = vmul.f32 %v1936_v33, %v1936_v33  ;;  %v688_v63 = vpop.f32.mrf.mxu1 }
 0x165   :  { %v828_v31 = vmul.f32 %v688_v63, %v688_v63 }
 0x166   :  { %v754_v47 = vadd.f32 %v753_v15, %v1920_v32  ;;  %v886_v60 = vadd.f32 %v885_v4, %v823_v1  ;;  %v827_v15 = vmul.f32 %v1928_v59, %v1928_v59 }
 0x168   :  { %v887_v42 = vadd.f32 %v886_v60, %v824_v23  ;;  %v755_v46 = vadd.f32 %v1912_v3, %v754_v47  ;;  %v829_v23 = vmul.f32 %v1944_v12, %v1944_v12 }
 0x16a   :  { %v756_v49 = vadd.f32 %v755_v46, %v1936_v33  ;;  %v888_v55 = vadd.f32 %v887_v42, %v825_v36 }
 0x16c   :  { %v889_v32 = vadd.f32 %v888_v55, %v826_v54  ;;  %v757_v1 = vadd.f32 %v1928_v59, %v756_v49 }
 0x16e   :  { %v758_v4 = vadd.f32 %v757_v1, %v688_v63  ;;  %v890_v19 = vadd.f32 %v889_v32, %v827_v15 }
 0x170   :  { %v759_v47 = vadd.f32 %v1944_v12, %v758_v4  ;;  %v891_v60 = vadd.f32 %v890_v19, %v828_v31  ;;  %v911_v19 = vlaneseq }
 0x172   :  { %v760_v46 = vrot.slane %v759_v47, 4  ;;  %v892_v3 = vadd.f32 %v891_v60, %v829_v23  ;;  %v912_v31 = vshrl.u32 %v911_v19, 7  ;;  %v2600_v19 = vld [vmem:[#allocation16_spill] sm:$0xff] }
 0x174   :  { %v761_v33 = vadd.f32 %v760_v46, %v759_v47  ;;  %v893_v36 = vrot.slane %v892_v3, 4 }
 0x176   :  { %v762_v42 = vrot.slane %v761_v33, 2  ;;  %v894_v27 = vadd.f32 %v893_v36, %v892_v3  ;;  %v904_v3 = vld [vmem:[%s2545_s2] sm:$0x1]  ;;  %s1541_s2 = smov [#allocation7]  }
 0x178   :  { %v763_v34 = vadd.f32 %v762_v42, %v761_v33  ;;  %v895_v38 = vrot.slane %v894_v27, 2  ;;  %v913_v33 = vsub.s32 0, %v912_v31  ;;  %v2601_v31 = vld [vmem:[#allocation15_spill] sm:$0xff] }
 0x17a   :  { %v764_v54 = vrot.slane %v763_v34, 1  ;;  %v896_v55 = vadd.f32 %v895_v38, %v894_v27  ;;  %v905_v38 = vld [vmem:[%s2546_s3] sm:$0x1]  ;;  %s1182_s3 = sshll.u32 %s1541_s2, 4  ;;  %s1183_s3 = int_to_ptr.vmem [resolvable:$true] %s1182_s3 }
 0x17b   :  { %s1511_s29 = scalar_lea.vmem %s1183_s3, 8192  ;;  %p1516_p11 = scmp.lt.s32.totalorder %s1183_s3, %s1183_s3 }
 0x17c   :  { %v765_v49 = vadd.f32 %v764_v54, %v763_v34  ;;  %v897_v1 = vrot.slane %v896_v55, 1  ;;  %p1512_p10 = scmp.ne.s32.totalorder %s1183_s3, %s1511_s29  ;;  %p1517_p12 = scmp.lt.s32.totalorder %s1511_s29, %s1511_s29 }
 0x17e   :  { %v898_v59 = vadd.f32 %v897_v1, %v896_v55  ;;  %v899_v32 = vmul.f32 0.001953125, %v765_v49  ;;  %v2596_v55 = vld [vmem:[#allocation11_spill] sm:$0xff]  ;;  %v2597_v49 = vld [vmem:[#allocation12_spill] sm:$0xff]  ;;  %v2598_v1 = vld [vmem:[#allocation13_spill] sm:$0xff]  ;;  %p1518_p13 = por %p1517_p12, %p1516_p11 }
 0x180   :  { %v900_v15 = vmul.f32 0.001953125, %v898_v59  ;;  %v901_v52 = vmul.f32 %v899_v32, %v899_v32  ;;  %p1519_p0 = pnand %p1518_p13, %p1512_p10 }
 0x182   :  { %v902_v8 = vsub.f32 %v900_v15, %v901_v52  ;;  %v2599_v15 = vld [vmem:[#allocation14_spill] sm:$0xff] }
 0x184   :  { %v903_v45 = vmax.f32 %v902_v8, 0.0 }
 0x186   :  { %v906_v4 = vadd.f32 1e-05, %v903_v45 }
 0x188   :  { %1469 = vrsqrt.f32 %v906_v4 }
 0x195   :  { %v1470_v23 = vpop.eup %1469 }
 0x196   :  { %v908_v47 = vmul.f32 %v1470_v23, %v904_v3  ;;  %v2603_v23 = vld [vmem:[#allocation17_spill] sm:$0xff] }
 0x198   :  { %v909_v34 = vmul.f32 %v908_v47, %v899_v32  ;;  %v1964_v27 = vrot.slane %v908_v47, %v913_v33 }
 0x19a   :  { %v910_v52 = vsub.f32 %v905_v38, %v909_v34  ;;  %v977_v45 = vmul.f32 %v1964_v27, %v688_v63  ;;  %v1969_v8 = vmul.f32 %v1964_v27, %v1645_v10  ;;  %v1973_v59 = vmul.f32 %v1643_v9, %v1964_v27  ;;  %v2604_v38 = vld [vmem:[#allocation20_spill] sm:$0xff]  ;;  %v2605_v34 = vld [vmem:[#allocation19_spill] sm:$0xff] }
 0x19b   :  { %v1977_v60 = vmul.f32 %v1964_v27, %v1659_v17  ;;  %v1981_v46 = vmul.f32 %v1651_v13, %v1964_v27  ;;  %v1985_v36 = vmul.f32 %v1964_v27, %v1671_v26  ;;  %v1989_v10 = vmul.f32 %v1664_v21, %v1964_v27 }
 0x19c   :  { %v1991_v63 = vrot.slane %v910_v52, %v913_v33  ;;  %v1995_v9 = vmul.f32 %v1964_v27, %v1683_v35  ;;  %v1999_v17 = vmul.f32 %v1676_v30, %v1964_v27  ;;  %v2003_v13 = vmul.f32 %v1964_v27, %v1695_v44  ;;  %v2602_v33 = vld [vmem:[#allocation18_spill] sm:$0xff] }
 0x19d   :  { %v2007_v26 = vmul.f32 %v1688_v39, %v1964_v27  ;;  %v2011_v21 = vmul.f32 %v1964_v27, %v1707_v53  ;;  %v2015_v35 = vmul.f32 %v1700_v48, %v1964_v27  ;;  %v2019_v30 = vmul.f32 %v1964_v27, %v1719_v62 }
 0x19e   :  { %v1047_v42 = vadd.f32 %v1991_v63, %v977_v45  ;;  %v2024_v44 = vmul.f32 %v1712_v57, %v1964_v27  ;;  %v2028_v39 = vmul.f32 %v1964_v27, %v1731_v7  ;;  %v2032_v53 = vmul.f32 %v1724_v2, %v1964_v27  ;;  %v2606_v45 = vld [vmem:[#allocation22_spill] sm:$0xff] }
 0x19f   :  { %v2036_v48 = vmul.f32 %v1964_v27, %v1743_v24  ;;  %v2040_v62 = vmul.f32 %v1736_v16, %v1964_v27  ;;  %v2044_v57 = vmul.f32 %v1964_v27, %v1755_v37  ;;  %v2048_v7 = vmul.f32 %v1748_v29, %v1964_v27 }
 0x1a0   :  { %v1111_v54 = vmax.f32 %v1047_v42, 0.0  ;;  %v2052_v2 = vmul.f32 %v1964_v27, %v1767_v51  ;;  %v2056_v24 = vmul.f32 %v1760_v43, %v1964_v27  ;;  %v2060_v16 = vmul.f32 %v1964_v27, %v1779_v0 }
 0x1a1   :  { %v2064_v37 = vmul.f32 %v1772_v56, %v1964_v27  ;;  %v2068_v29 = vmul.f32 %v1964_v27, %v1791_v20  ;;  %v2072_v51 = vmul.f32 %v1784_v6, %v1964_v27  ;;  %v2076_v43 = vmul.f32 %v1964_v27, %v1803_v41 }
 0x1a2   :  { %1175 = vst [vmem:[#allocation7 + $0x1f0] sm:$0xff] %v1111_v54  ;;  %v2080_v0 = vmul.f32 %v1796_v28, %v1964_v27  ;;  %v2084_v56 = vmul.f32 %v1964_v27, %v1815_v61  ;;  %v2088_v20 = vmul.f32 %v1808_v50, %v1964_v27  ;;  %v2092_v6 = vmul.f32 %v1964_v27, %v1827_v25  ;;  %v2607_v54 = vld [vmem:[#allocation21_spill] sm:$0xff] }
 0x1a3   :  { %v2096_v41 = vmul.f32 %v1820_v5, %v1964_v27  ;;  %v2100_v28 = vmul.f32 %v1964_v27, %v1653_v14  ;;  %v2104_v61 = vmul.f32 %v1647_v11, %v1964_v27  ;;  %v2108_v50 = vmul.f32 %v1964_v27, %v2596_v55 }
 0x1a4   :  { %v2112_v25 = vmul.f32 %v1666_v22, %v1964_v27  ;;  %v2116_v5 = vmul.f32 %v1964_v27, %v2597_v49  ;;  %v2120_v14 = vmul.f32 %v1690_v40, %v1964_v27  ;;  %v2124_v11 = vmul.f32 %v1964_v27, %v2598_v1  ;;  %v2608_v49 = vld [vmem:[#allocation24_spill] sm:$0xff] }
 0x1a5   :  { %v2128_v32 = vmul.f32 %v1714_v58, %v1964_v27  ;;  %v2132_v22 = vmul.f32 %v1964_v27, %v2599_v15  ;;  %v2136_v4 = vmul.f32 %v1738_v18, %v1964_v27  ;;  %v2140_v40 = vmul.f32 %v1964_v27, %v2600_v19  ;;  %v2610_v15 = vld [vmem:[#allocation23_spill] sm:$0xff] }
 0x1a6   :  { %v2144_v3 = vmul.f32 %v2601_v31, %v1964_v27  ;;  %v2148_v58 = vmul.f32 %v1964_v27, %v2602_v33  ;;  %v2152_v47 = vmul.f32 %v2603_v23, %v1964_v27  ;;  %v2156_v18 = vmul.f32 %v1964_v27, %v2604_v38  ;;  %v2612_v31 = vld [vmem:[#allocation26_spill] sm:$0xff]  ;;  %v2614_v23 = vld [vmem:[#allocation25_spill] sm:$0xff] }
 0x1a7   :  { %v2160_v52 = vmul.f32 %v2605_v34, %v1964_v27  ;;  %v2164_v42 = vmul.f32 %v1964_v27, %v2606_v45  ;;  %v2168_v55 = vmul.f32 %v2607_v54, %v1964_v27  ;;  %v2172_v1 = vmul.f32 %v1964_v27, %v2608_v49  ;;  %v2616_v34 = vld [vmem:[#allocation28_spill] sm:$0xff]  ;;  %v2618_v54 = vld [vmem:[#allocation27_spill] sm:$0xff] }
 0x1a8   :  { %v2176_v19 = vmul.f32 %v2610_v15, %v1964_v27  ;;  %v2180_v33 = vmul.f32 %v1964_v27, %v2612_v31  ;;  %v2184_v38 = vmul.f32 %v2614_v23, %v1964_v27  ;;  %v2188_v45 = vmul.f32 %v1964_v27, %v2616_v34 }
 0x1a9   :  { %2609 = vst [vmem:[#allocation11_spill] sm:$0xff] %v2172_v1  ;;  %v2192_v49 = vmul.f32 %v2618_v54, %v1964_v27  ;;  %v2620_v1 = vld [vmem:[#allocation30_spill] sm:$0xff] }
 0x1aa   :  { %2611 = vst [vmem:[#allocation12_spill] sm:$0xff] %v2176_v19  ;;  %2613 = vst [vmem:[#allocation13_spill] sm:$0xff] %v2180_v33  ;;  %v2196_v15 = vmul.f32 %v1964_v27, %v2620_v1  ;;  %v2621_v19 = vld [vmem:[#allocation29_spill] sm:$0xff]  ;;  %v2622_v33 = vld [vmem:[#allocation32_spill] sm:$0xff] }
 0x1ab   :  { %2615 = vst [vmem:[#allocation14_spill] sm:$0xff] %v2184_v38  ;;  %2617 = vst [vmem:[#allocation16_spill] sm:$0xff] %v2188_v45  ;;  %v2200_v31 = vmul.f32 %v2621_v19, %v1964_v27  ;;  %v2204_v23 = vmul.f32 %v1964_v27, %v2622_v33  ;;  %v2623_v38 = vld [vmem:[#allocation31_spill] sm:$0xff]  ;;  %v2624_v45 = vld [vmem:[#allocation34_spill] sm:$0xff]  ;;  %v2220_v19 = vmul.f32 %v1944_v12, %v1964_v27 }
 0x1ac   :  { %2619 = vst [vmem:[#allocation15_spill] sm:$0xff] %v2192_v49  ;;  %v2208_v34 = vmul.f32 %v2623_v38, %v1964_v27  ;;  %v2212_v54 = vmul.f32 %v1964_v27, %v2624_v45  ;;  %v2625_v49 = vld [vmem:[#allocation33_spill] sm:$0xff]  ;;  %v2224_v33 = vadd.f32 %v1991_v63, %v1969_v8  ;;  %v2228_v38 = vadd.f32 %v1991_v63, %v1973_v59 }
 0x1ad   :  { %v2216_v1 = vmul.f32 %v2625_v49, %v1964_v27  ;;  %v2232_v45 = vadd.f32 %v1991_v63, %v1977_v60  ;;  %v2236_v49 = vadd.f32 %v1991_v63, %v1981_v46  ;;  %v2240_v12 = vadd.f32 %v1991_v63, %v1985_v36 }
 0x1ae   :  { %v2244_v27 = vadd.f32 %v1991_v63, %v1989_v10  ;;  %v2248_v8 = vadd.f32 %v1991_v63, %v1995_v9  ;;  %v2252_v59 = vadd.f32 %v1991_v63, %v1999_v17  ;;  %v2256_v60 = vadd.f32 %v1991_v63, %v2003_v13 }
 0x1af   :  { %v2260_v46 = vadd.f32 %v1991_v63, %v2007_v26  ;;  %v2264_v36 = vadd.f32 %v1991_v63, %v2011_v21  ;;  %v2268_v10 = vadd.f32 %v1991_v63, %v2015_v35  ;;  %v2272_v9 = vadd.f32 %v1991_v63, %v2019_v30 }
 0x1b0   :  { %v2276_v17 = vadd.f32 %v1991_v63, %v2024_v44  ;;  %v2280_v13 = vadd.f32 %v1991_v63, %v2028_v39  ;;  %v2284_v26 = vadd.f32 %v1991_v63, %v2032_v53  ;;  %v2288_v21 = vadd.f32 %v1991_v63, %v2036_v48 }
 0x1b1   :  { %v2292_v35 = vadd.f32 %v1991_v63, %v2040_v62  ;;  %v2296_v30 = vadd.f32 %v1991_v63, %v2044_v57  ;;  %v2300_v44 = vadd.f32 %v1991_v63, %v2048_v7  ;;  %v2304_v39 = vadd.f32 %v1991_v63, %v2052_v2 }
 0x1b2   :  { %v2308_v53 = vadd.f32 %v1991_v63, %v2056_v24  ;;  %v2312_v48 = vadd.f32 %v1991_v63, %v2060_v16  ;;  %v2316_v62 = vadd.f32 %v1991_v63, %v2064_v37  ;;  %v2320_v57 = vadd.f32 %v1991_v63, %v2068_v29 }
 0x1b3   :  { %v2324_v7 = vadd.f32 %v1991_v63, %v2072_v51  ;;  %v2328_v2 = vadd.f32 %v1991_v63, %v2076_v43  ;;  %v2332_v24 = vadd.f32 %v1991_v63, %v2080_v0  ;;  %v2336_v16 = vadd.f32 %v1991_v63, %v2084_v56 }
 0x1b4   :  { %v2340_v37 = vadd.f32 %v1991_v63, %v2088_v20  ;;  %v2344_v29 = vadd.f32 %v1991_v63, %v2092_v6  ;;  %v2348_v51 = vadd.f32 %v1991_v63, %v2096_v41  ;;  %v2352_v43 = vadd.f32 %v1991_v63, %v2100_v28 }
 0x1b5   :  { %v2356_v0 = vadd.f32 %v1991_v63, %v2104_v61  ;;  %v2360_v56 = vadd.f32 %v1991_v63, %v2108_v50  ;;  %v2364_v20 = vadd.f32 %v1991_v63, %v2112_v25  ;;  %v2368_v6 = vadd.f32 %v1991_v63, %v2116_v5 }
 0x1b6   :  { %v2372_v41 = vadd.f32 %v1991_v63, %v2120_v14  ;;  %v2376_v28 = vadd.f32 %v1991_v63, %v2124_v11  ;;  %v2380_v61 = vadd.f32 %v1991_v63, %v2128_v32  ;;  %v2384_v50 = vadd.f32 %v1991_v63, %v2132_v22 }
 0x1b7   :  { %v2388_v25 = vadd.f32 %v1991_v63, %v2136_v4  ;;  %v2392_v5 = vadd.f32 %v1991_v63, %v2140_v40  ;;  %v2396_v14 = vadd.f32 %v1991_v63, %v2144_v3  ;;  %v2400_v11 = vadd.f32 %v1991_v63, %v2148_v58  ;;  %v2631_v58 = vld [vmem:[#allocation11_spill] sm:$0xff] }
 0x1b8   :  { %v2404_v32 = vadd.f32 %v1991_v63, %v2152_v47  ;;  %v2408_v22 = vadd.f32 %v1991_v63, %v2156_v18  ;;  %v2412_v4 = vadd.f32 %v1991_v63, %v2160_v52  ;;  %v2416_v40 = vadd.f32 %v1991_v63, %v2164_v42 }
 0x1b9   :  { %v2420_v3 = vadd.f32 %v1991_v63, %v2168_v55  ;;  %v2424_v47 = vadd.f32 %v1991_v63, %v2631_v58 }
 0x1ba   :  { %2626 = vst [vmem:[#allocation18_spill] sm:$0xff] %v2404_v32  ;;  %2627 = vst [vmem:[#allocation17_spill] sm:$0xff] %v2408_v22  ;;  %v2632_v32 = vld [vmem:[#allocation12_spill] sm:$0xff]  ;;  %v2633_v22 = vld [vmem:[#allocation13_spill] sm:$0xff] }
 0x1bb   :  { %2628 = vst [vmem:[#allocation20_spill] sm:$0xff] %v2412_v4  ;;  %2629 = vst [vmem:[#allocation19_spill] sm:$0xff] %v2416_v40  ;;  %v2428_v18 = vadd.f32 %v1991_v63, %v2632_v32  ;;  %v2432_v52 = vadd.f32 %v1991_v63, %v2633_v22  ;;  %v2634_v4 = vld [vmem:[#allocation14_spill] sm:$0xff]  ;;  %v2635_v40 = vld [vmem:[#allocation16_spill] sm:$0xff]  ;;  %v2448_v32 = vadd.f32 %v1991_v63, %v2196_v15 }
 0x1bc   :  { %2630 = vst [vmem:[#allocation22_spill] sm:$0xff] %v2420_v3  ;;  %v2436_v42 = vadd.f32 %v1991_v63, %v2634_v4  ;;  %v2440_v55 = vadd.f32 %v1991_v63, %v2635_v40  ;;  %v2636_v3 = vld [vmem:[#allocation15_spill] sm:$0xff]  ;;  %v2452_v22 = vadd.f32 %v1991_v63, %v2200_v31  ;;  %v2456_v4 = vadd.f32 %v1991_v63, %v2204_v23 }
 0x1bd   :  { %v2444_v58 = vadd.f32 %v1991_v63, %v2636_v3  ;;  %v2460_v40 = vadd.f32 %v1991_v63, %v2208_v34  ;;  %v2464_v3 = vadd.f32 %v1991_v63, %v2212_v54  ;;  %v2468_v15 = vadd.f32 %v1991_v63, %v2216_v1 }
 0x1be   :  { %2637 = vst [vmem:[#allocation21_spill] sm:$0xff] %v2452_v22  ;;  %2638 = vst [vmem:[#allocation24_spill] sm:$0xff] %v2456_v4  ;;  %v2472_v31 = vadd.f32 %v1991_v63, %v2220_v19  ;;  %v1049_v22 = vmax.f32 %v2224_v33, 0.0  ;;  %v1050_v23 = vmax.f32 %v2228_v38, 0.0  ;;  %v1051_v4 = vmax.f32 %v2232_v45, 0.0 }
 0x1bf   :  { %2639 = vst [vmem:[#allocation23_spill] sm:$0xff] %v2460_v40  ;;  %2640 = vst [vmem:[#allocation26_spill] sm:$0xff] %v2464_v3  ;;  %v1052_v34 = vmax.f32 %v2236_v49, 0.0  ;;  %v1053_v40 = vmax.f32 %v2240_v12, 0.0  ;;  %v1054_v54 = vmax.f32 %v2244_v27, 0.0  ;;  %v1055_v3 = vmax.f32 %v2248_v8, 0.0 }
 0x1c0   :  { %2641 = vst [vmem:[#allocation25_spill] sm:$0xff] %v2468_v15  ;;  %v1056_v1 = vmax.f32 %v2252_v59, 0.0  ;;  %v1057_v15 = vmax.f32 %v2256_v60, 0.0  ;;  %1113 = vst [vmem:[#allocation7] sm:$0xff] %v1049_v22  ;;  %v1058_v63 = vmax.f32 %v2260_v46, 0.0  ;;  %v1059_v19 = vmax.f32 %v2264_v36, 0.0 }
 0x1c1   :  { %v1060_v33 = vmax.f32 %v2268_v10, 0.0  ;;  %v1061_v38 = vmax.f32 %v2272_v9, 0.0  ;;  %1114 = vst [vmem:[#allocation7 + $0x8] sm:$0xff] %v1050_v23  ;;  %1115 = vst [vmem:[#allocation7 + $0x10] sm:$0xff] %v1051_v4  ;;  %v1062_v45 = vmax.f32 %v2276_v17, 0.0  ;;  %v1063_v49 = vmax.f32 %v2280_v13, 0.0 }
 0x1c2   :  { %1116 = vst [vmem:[#allocation7 + $0x18] sm:$0xff] %v1052_v34  ;;  %1117 = vst [vmem:[#allocation7 + $0x20] sm:$0xff] %v1053_v40  ;;  %v1064_v12 = vmax.f32 %v2284_v26, 0.0  ;;  %v1065_v27 = vmax.f32 %v2288_v21, 0.0  ;;  %v1066_v8 = vmax.f32 %v2292_v35, 0.0  ;;  %v1067_v59 = vmax.f32 %v2296_v30, 0.0 }
 0x1c3   :  { %1118 = vst [vmem:[#allocation7 + $0x28] sm:$0xff] %v1054_v54  ;;  %1119 = vst [vmem:[#allocation7 + $0x30] sm:$0xff] %v1055_v3  ;;  %v1068_v60 = vmax.f32 %v2300_v44, 0.0  ;;  %v1069_v46 = vmax.f32 %v2304_v39, 0.0  ;;  %v1070_v36 = vmax.f32 %v2308_v53, 0.0  ;;  %v1071_v10 = vmax.f32 %v2312_v48, 0.0 }
 0x1c4   :  { %1120 = vst [vmem:[#allocation7 + $0x38] sm:$0xff] %v1056_v1  ;;  %1121 = vst [vmem:[#allocation7 + $0x40] sm:$0xff] %v1057_v15  ;;  %v1072_v9 = vmax.f32 %v2316_v62, 0.0  ;;  %v1073_v17 = vmax.f32 %v2320_v57, 0.0  ;;  %v1074_v13 = vmax.f32 %v2324_v7, 0.0  ;;  %v1075_v26 = vmax.f32 %v2328_v2, 0.0 }
 0x1c5   :  { %1122 = vst [vmem:[#allocation7 + $0x48] sm:$0xff] %v1058_v63  ;;  %1123 = vst [vmem:[#allocation7 + $0x50] sm:$0xff] %v1059_v19  ;;  %v1076_v21 = vmax.f32 %v2332_v24, 0.0  ;;  %v1077_v35 = vmax.f32 %v2336_v16, 0.0  ;;  %v1078_v30 = vmax.f32 %v2340_v37, 0.0  ;;  %v1079_v44 = vmax.f32 %v2344_v29, 0.0 }
 0x1c6   :  { %1124 = vst [vmem:[#allocation7 + $0x58] sm:$0xff] %v1060_v33  ;;  %1125 = vst [vmem:[#allocation7 + $0x60] sm:$0xff] %v1061_v38  ;;  %v1080_v39 = vmax.f32 %v2348_v51, 0.0  ;;  %v1081_v53 = vmax.f32 %v2352_v43, 0.0  ;;  %v1082_v48 = vmax.f32 %v2356_v0, 0.0  ;;  %v1083_v62 = vmax.f32 %v2360_v56, 0.0 }
 0x1c7   :  { %1126 = vst [vmem:[#allocation7 + $0x68] sm:$0xff] %v1062_v45  ;;  %1127 = vst [vmem:[#allocation7 + $0x70] sm:$0xff] %v1063_v49  ;;  %v1084_v57 = vmax.f32 %v2364_v20, 0.0  ;;  %v1085_v7 = vmax.f32 %v2368_v6, 0.0  ;;  %v1086_v2 = vmax.f32 %v2372_v41, 0.0  ;;  %v1087_v24 = vmax.f32 %v2376_v28, 0.0 }
 0x1c8   :  { %1128 = vst [vmem:[#allocation7 + $0x78] sm:$0xff] %v1064_v12  ;;  %1129 = vst [vmem:[#allocation7 + $0x80] sm:$0xff] %v1065_v27  ;;  %v1088_v16 = vmax.f32 %v2380_v61, 0.0  ;;  %v1089_v37 = vmax.f32 %v2384_v50, 0.0  ;;  %v1090_v29 = vmax.f32 %v2388_v25, 0.0  ;;  %v1091_v51 = vmax.f32 %v2392_v5, 0.0 }
 0x1c9   :  { %1130 = vst [vmem:[#allocation7 + $0x88] sm:$0xff] %v1066_v8  ;;  %1131 = vst [vmem:[#allocation7 + $0x90] sm:$0xff] %v1067_v59  ;;  %v1092_v43 = vmax.f32 %v2396_v14, 0.0  ;;  %v1093_v0 = vmax.f32 %v2400_v11, 0.0  ;;  %v2642_v56 = vld [vmem:[#allocation18_spill] sm:$0xff]  ;;  %v2643_v6 = vld [vmem:[#allocation17_spill] sm:$0xff] }
 0x1ca   :  { %1132 = vst [vmem:[#allocation7 + $0x98] sm:$0xff] %v1068_v60  ;;  %1133 = vst [vmem:[#allocation7 + $0xa0] sm:$0xff] %v1069_v46  ;;  %v1094_v20 = vmax.f32 %v2642_v56, 0.0  ;;  %v1095_v41 = vmax.f32 %v2643_v6, 0.0  ;;  %v2644_v28 = vld [vmem:[#allocation20_spill] sm:$0xff]  ;;  %v2645_v50 = vld [vmem:[#allocation19_spill] sm:$0xff] }
 0x1cb   :  { %1134 = vst [vmem:[#allocation7 + $0xa8] sm:$0xff] %v1070_v36  ;;  %1135 = vst [vmem:[#allocation7 + $0xb0] sm:$0xff] %v1071_v10  ;;  %v1096_v61 = vmax.f32 %v2644_v28, 0.0  ;;  %v1097_v22 = vmax.f32 %v2645_v50, 0.0  ;;  %v2646_v25 = vld [vmem:[#allocation22_spill] sm:$0xff]  ;;  %v1099_v14 = vmax.f32 %v2424_v47, 0.0 }
 0x1cc   :  { %1136 = vst [vmem:[#allocation7 + $0xb8] sm:$0xff] %v1072_v9  ;;  %1137 = vst [vmem:[#allocation7 + $0xc0] sm:$0xff] %v1073_v17  ;;  %v1098_v5 = vmax.f32 %v2646_v25, 0.0  ;;  %v1100_v11 = vmax.f32 %v2428_v18, 0.0  ;;  %v1101_v4 = vmax.f32 %v2432_v52, 0.0  ;;  %v1102_v40 = vmax.f32 %v2436_v42, 0.0 }
 0x1cd   :  { %1138 = vst [vmem:[#allocation7 + $0xc8] sm:$0xff] %v1074_v13  ;;  %1139 = vst [vmem:[#allocation7 + $0xd0] sm:$0xff] %v1075_v26  ;;  %v1103_v3 = vmax.f32 %v2440_v55, 0.0  ;;  %v1104_v15 = vmax.f32 %v2444_v58, 0.0  ;;  %v1105_v23 = vmax.f32 %v2448_v32, 0.0  ;;  %v2647_v47 = vld [vmem:[#allocation21_spill] sm:$0xff] }
 0x1ce   :  { %1140 = vst [vmem:[#allocation7 + $0xd8] sm:$0xff] %v1076_v21  ;;  %1141 = vst [vmem:[#allocation7 + $0xe0] sm:$0xff] %v1077_v35  ;;  %v1106_v18 = vmax.f32 %v2647_v47, 0.0  ;;  %v2648_v52 = vld [vmem:[#allocation24_spill] sm:$0xff]  ;;  %v2649_v54 = vld [vmem:[#allocation23_spill] sm:$0xff]  ;;  %v1112_v58 = vmax.f32 %v2472_v31, 0.0 }
 0x1cf   :  { %1142 = vst [vmem:[#allocation7 + $0xe8] sm:$0xff] %v1078_v30  ;;  %1143 = vst [vmem:[#allocation7 + $0xf0] sm:$0xff] %v1079_v44  ;;  %v1107_v34 = vmax.f32 %v2648_v52, 0.0  ;;  %v1108_v1 = vmax.f32 %v2649_v54, 0.0  ;;  %v2650_v63 = vld [vmem:[#allocation26_spill] sm:$0xff]  ;;  %v2651_v42 = vld [vmem:[#allocation25_spill] sm:$0xff] }
 0x1d0   :  { %1144 = vst [vmem:[#allocation7 + $0xf8] sm:$0xff] %v1080_v39  ;;  %1145 = vst [vmem:[#allocation7 + $0x100] sm:$0xff] %v1081_v53  ;;  %v1109_v19 = vmax.f32 %v2650_v63, 0.0  ;;  %v1110_v55 = vmax.f32 %v2651_v42, 0.0 }
 0x1d1   :  { %1146 = vst [vmem:[#allocation7 + $0x108] sm:$0xff] %v1082_v48  ;;  %1147 = vst [vmem:[#allocation7 + $0x110] sm:$0xff] %v1083_v62 }
 0x1d2   :  { %1148 = vst [vmem:[#allocation7 + $0x118] sm:$0xff] %v1084_v57  ;;  %1149 = vst [vmem:[#allocation7 + $0x120] sm:$0xff] %v1085_v7 }
 0x1d3   :  { %1150 = vst [vmem:[#allocation7 + $0x128] sm:$0xff] %v1086_v2  ;;  %1151 = vst [vmem:[#allocation7 + $0x130] sm:$0xff] %v1087_v24 }
 0x1d4   :  { %1152 = vst [vmem:[#allocation7 + $0x138] sm:$0xff] %v1088_v16  ;;  %1153 = vst [vmem:[#allocation7 + $0x140] sm:$0xff] %v1089_v37 }
 0x1d5   :  { %1154 = vst [vmem:[#allocation7 + $0x148] sm:$0xff] %v1090_v29  ;;  %1155 = vst [vmem:[#allocation7 + $0x150] sm:$0xff] %v1091_v51 }
 0x1d6   :  { %1156 = vst [vmem:[#allocation7 + $0x158] sm:$0xff] %v1092_v43  ;;  %1157 = vst [vmem:[#allocation7 + $0x160] sm:$0xff] %v1093_v0 }
 0x1d7   :  { %1158 = vst [vmem:[#allocation7 + $0x168] sm:$0xff] %v1094_v20  ;;  %1159 = vst [vmem:[#allocation7 + $0x170] sm:$0xff] %v1095_v41 }
 0x1d8   :  { %1160 = vst [vmem:[#allocation7 + $0x178] sm:$0xff] %v1096_v61  ;;  %1161 = vst [vmem:[#allocation7 + $0x180] sm:$0xff] %v1097_v22 }
 0x1d9   :  { %1162 = vst [vmem:[#allocation7 + $0x188] sm:$0xff] %v1098_v5  ;;  %1163 = vst [vmem:[#allocation7 + $0x190] sm:$0xff] %v1099_v14 }
 0x1da   :  { %1164 = vst [vmem:[#allocation7 + $0x198] sm:$0xff] %v1100_v11  ;;  %1165 = vst [vmem:[#allocation7 + $0x1a0] sm:$0xff] %v1101_v4 }
 0x1db   :  { %1166 = vst [vmem:[#allocation7 + $0x1a8] sm:$0xff] %v1102_v40  ;;  %1167 = vst [vmem:[#allocation7 + $0x1b0] sm:$0xff] %v1103_v3 }
 0x1dc   :  { %1168 = vst [vmem:[#allocation7 + $0x1b8] sm:$0xff] %v1104_v15  ;;  %1169 = vst [vmem:[#allocation7 + $0x1c0] sm:$0xff] %v1105_v23 }
 0x1dd   :  { %1170 = vst [vmem:[#allocation7 + $0x1c8] sm:$0xff] %v1106_v18  ;;  %1171 = vst [vmem:[#allocation7 + $0x1d0] sm:$0xff] %v1107_v34 }
 0x1de   :  { %1172 = vst [vmem:[#allocation7 + $0x1d8] sm:$0xff] %v1108_v1  ;;  %1173 = vst [vmem:[#allocation7 + $0x1e0] sm:$0xff] %v1109_v19 }
 0x1df   :  { %1174 = vst [vmem:[#allocation7 + $0x1e8] sm:$0xff] %v1110_v55  ;;  %1176 = vst [vmem:[#allocation7 + $0x1f8] sm:$0xff] %v1112_v58 }
 0x1e0   :  { %1522 = shalt.err (!%p1519_p0)
}
 0x1e1   :  { %1188 = dma.vmem_to_hbm [thread:$0]  %s1183_s3, 8192, %s2547_s4, [#allocation4], %s1538_s18, %s1538_s18, %s1539_s19  }
 0x1e2   :  { %1535 = dma.done.wait [#allocation4], 8192  }
 0x1e3   :  { %1536 = vsyncadd [#allocation4], 4294959104 }
 0x1e4   :  { %1192 = vsyncpa [#allocation3], 1 }
 0x1e5   :  { %1193 = vsyncpa [#allocation6], 1 }
 0x1e6   :  { %1194 = vsyncpa [#allocation4], 1 }

</bundles_post_ra>
